<compile_context>
chip_gen: v7x
topology: tpu7x:2x2x1
jax: 0.10.0
libtpu: 0.0.40
codegen_flags: <defaults>
</compile_context>

<pallas_src>
import jax
import jax.numpy as jnp
from jax import lax
from jax.experimental import pallas as pl
from jax.experimental.pallas import tpu as pltpu

NUM_GROUPS = 32   # torch.nn.GroupNorm(num_groups=32, ...)
EPS = 1e-6


def attn_block(x_nchw, params, *, tq=128, tk=128):
    """x_nchw: (B, C, H, W) float32; params: dict of parameters."""
    B, C, H, W = x_nchw.shape
    assert C % NUM_GROUPS == 0, "GroupNorm(32) requires C % 32 == 0"
    HW = H * W
    gs = C // NUM_GROUPS
    TQ = tq if HW % tq == 0 else HW
    TK = tk if HW % tk == 0 else HW
    nq = HW // TQ
    nk = HW // TK
    scale = float(C) ** -0.5

    # NCHW -> (B, HW, C) channels-last for a lane-dense layout.
    # TODO(synk): in a real model keep activations channels-last end-to-end so
    # these two wrapper transposes (full extra HBM passes) disappear.
    x = jnp.transpose(x_nchw.reshape(B, C, HW), (0, 2, 1)).astype(jnp.float32)

    # one-hot group membership matrix (C, NUM_GROUPS)
    G = (jnp.arange(C)[:, None] // gs ==
         jnp.arange(NUM_GROUPS)[None, :]).astype(jnp.float32)

    gamma = params["gamma"].reshape(1, C).astype(jnp.float32)
    beta = params["beta"].reshape(1, C).astype(jnp.float32)
    # conv weights are (C_out, C_in); transpose so the kernel does x @ W.
    # Fold the 1/sqrt(C) attention scale into the q projection.
    wqT = (params["wq"].T * scale).astype(jnp.bfloat16)
    bq = (params["bq"] * scale).reshape(1, C).astype(jnp.float32)
    wkT = params["wk"].T.astype(jnp.bfloat16)
    bk = params["bk"].reshape(1, C).astype(jnp.float32)
    wvT = params["wv"].T.astype(jnp.bfloat16)
    bv = params["bv"].reshape(1, C).astype(jnp.float32)
    wpT = params["wp"].T.astype(jnp.bfloat16)
    bp = params["bp"].reshape(1, C).astype(jnp.float32)

    # ------------------------------ kernel -----------------------------------
    def kernel(x_ref, gamma_ref, beta_ref, g_ref,
               wq_ref, bq_ref, wk_ref, bk_ref, wv_ref, bv_ref, wp_ref, bp_ref,
               o_ref, k_scr, v_scr, a_scr, b_scr, m_scr, l_scr, acc_scr):
        qi = pl.program_id(1)

        # Per batch element (first query tile only): GroupNorm stats via the
        # MXU, then k/v projections into persistent VMEM scratch that is
        # reused by every query tile of this batch element.
        @pl.when(qi == 0)
        def _():
            xf = x_ref[0]                                    # (HW, C) f32
            ones_row = jnp.ones((1, HW), jnp.float32)
            s1 = jnp.dot(ones_row, xf, preferred_element_type=jnp.float32)
            s2 = jnp.dot(ones_row, xf * xf, preferred_element_type=jnp.float32)
            Gm = g_ref[...]                                  # (C, NG)
            inv_n = jnp.float32(1.0 / (gs * HW))
            gmean = jnp.dot(s1, Gm, preferred_element_type=jnp.float32) * inv_n
            gsq = jnp.dot(s2, Gm, preferred_element_type=jnp.float32) * inv_n
            gvar = jnp.maximum(gsq - gmean * gmean, 0.0)     # clamp: no neg var
            mean_c = lax.dot_general(gmean, Gm, (((1,), (1,)), ((), ())),
                                     preferred_element_type=jnp.float32)
            var_c = lax.dot_general(gvar, Gm, (((1,), (1,)), ((), ())),
                                    preferred_element_type=jnp.float32)
            a = gamma_ref[...] * lax.rsqrt(var_c + EPS)      # (1, C)
            bsh = beta_ref[...] - mean_c * a                 # (1, C)
            a_scr[...] = a
            b_scr[...] = bsh
            hnb = (xf * a + bsh).astype(jnp.bfloat16)        # fused norm+affine
            k_scr[...] = (jnp.dot(hnb, wk_ref[...],
                                  preferred_element_type=jnp.float32)
                          + bk_ref[...]).astype(jnp.bfloat16)
            v_scr[...] = (jnp.dot(hnb, wv_ref[...],
                                  preferred_element_type=jnp.float32)
                          + bv_ref[...]).astype(jnp.bfloat16)

        # ----------------- this query tile: q projection ---------------------
        row0 = pl.multiple_of(qi * TQ, TQ)
        x_t = x_ref[0, pl.ds(row0, TQ), :]                   # (TQ, C) f32
        hn_t = (x_t * a_scr[...] + b_scr[...]).astype(jnp.bfloat16)
        q = jnp.dot(hn_t, wq_ref[...],
                    preferred_element_type=jnp.float32) + bq_ref[...]
        qb = q.astype(jnp.bfloat16)                          # scale already folded

        # --------------- flash attention over KV tiles -----------------------
        m_scr[...] = jnp.full((TQ, 1), -jnp.inf, jnp.float32)
        l_scr[...] = jnp.zeros((TQ, 1), jnp.float32)
        acc_scr[...] = jnp.zeros((TQ, C), jnp.float32)

        @pl.loop(0, nk)
        def _(j):
            col0 = pl.multiple_of(j * TK, TK)
            kt = k_scr[pl.ds(col0, TK), :]                   # (TK, C) bf16
            vt = v_scr[pl.ds(col0, TK), :]                   # (TK, C) bf16
            s = lax.dot_general(qb, kt, (((1,), (1,)), ((), ())),
                                preferred_element_type=jnp.float32)  # (TQ, TK)
            m_prev = m_scr[...]
            m_new = jnp.maximum(m_prev, jnp.max(s, axis=-1, keepdims=True))
            alpha = jnp.exp(m_prev - m_new)
            p = jnp.exp(s - m_new)
            l_scr[...] = alpha * l_scr[...] + jnp.sum(p, axis=-1, keepdims=True)
            acc_scr[...] = alpha * acc_scr[...] + jnp.dot(
                p.astype(jnp.bfloat16), vt, preferred_element_type=jnp.float32)
            m_scr[...] = m_new

        # ------------- normalize, output projection, residual ----------------
        attn = acc_scr[...] * pl.reciprocal(l_scr[...], approx=True)
        h = jnp.dot(attn.astype(jnp.bfloat16), wp_ref[...],
                    preferred_element_type=jnp.float32) + bp_ref[...]
        o_ref[0] = x_t + h

    # --------------------------- VMEM budget ----------------------------------
    f32b, bf16b = 4, 2
    vmem_est = (HW * C * f32b * 2                      # x slab (double-buffered)
                + TQ * C * f32b * 2                    # out tile
                + 4 * C * C * bf16b * 2                # weights (double-buffered)
                + 10 * C * f32b * 2 + C * NUM_GROUPS * f32b * 2
                + 2 * HW * C * bf16b                   # k/v scratch
                + 2 * C * f32b + 2 * TQ * 128 * f32b + TQ * C * f32b
                + (4 << 20))                           # slack
    vmem_limit = max(32 << 20, min(int(vmem_est), 64 << 20))  # <= v7x physical

    # --------------------------- pallas_call ----------------------------------
    c_cc = pl.BlockSpec((C, C), lambda b, i: (0, 0))
    c_1c = pl.BlockSpec((1, C), lambda b, i: (0, 0))
    c_cg = pl.BlockSpec((C, NUM_GROUPS), lambda b, i: (0, 0))
    grid_spec = pltpu.PrefetchScalarGridSpec(
        num_scalar_prefetch=0,
        grid=(B, nq),
        in_specs=[
            pl.BlockSpec((1, HW, C), lambda b, i: (b, 0, 0)),   # x (full slab)
            c_1c, c_1c,                                         # gamma, beta
            c_cg,                                               # G
            c_cc, c_1c,                                         # wq, bq
            c_cc, c_1c,                                         # wk, bk
            c_cc, c_1c,                                         # wv, bv
            c_cc, c_1c,                                         # wp, bp
        ],
        out_specs=pl.BlockSpec((1, TQ, C), lambda b, i: (b, i, 0)),
        scratch_shapes=[
            pltpu.VMEM((HW, C), jnp.bfloat16),   # k (resident per batch elem)
            pltpu.VMEM((HW, C), jnp.bfloat16),   # v
            pltpu.VMEM((1, C), jnp.float32),     # groupnorm scale
            pltpu.VMEM((1, C), jnp.float32),     # groupnorm shift
            pltpu.VMEM((TQ, 1), jnp.float32),    # running max
            pltpu.VMEM((TQ, 1), jnp.float32),    # running sum
            pltpu.VMEM((TQ, C), jnp.float32),    # attention accumulator
        ],
    )
    out = pl.pallas_call(
        kernel,
        out_shape=jax.ShapeDtypeStruct((B, HW, C), jnp.float32),
        grid_spec=grid_spec,
        compiler_params=pltpu.CompilerParams(
            dimension_semantics=("parallel", "arbitrary"),
            vmem_limit_bytes=vmem_limit),
    )(x, gamma, beta, G, wqT, bq, wkT, bk, wvT, bv, wpT, bp)

    # (B, HW, C) -> NCHW
    return jnp.transpose(out, (0, 2, 1)).reshape(B, C, H, W)


# ------------------------------ reference -------------------------------------
def ref_attn_block(x, params):
    """Plain-JAX reference reproducing the PyTorch forward exactly (f32)."""
    B, C, H, W = x.shape
    gs = C // NUM_GROUPS
    HW = H * W
    xr = x.reshape(B, NUM_GROUPS, gs, HW)
    mean = xr.mean(axis=(2, 3), keepdims=True)
    var = ((xr - mean) ** 2).mean(axis=(2, 3), keepdims=True)
    hn = ((xr - mean) / jnp.sqrt(var + EPS)).reshape(B, C, HW)
    hn = hn * params["gamma"][None, :, None] + params["beta"][None, :, None]

    def conv1x1(h, w, b):  # h: (B, C, HW), w: (Cout, Cin), b: (Cout,)
        return jnp.einsum("oc,bcn->bon", w, h) + b[None, :, None]

    q = conv1x1(hn, params["wq"], params["bq"])
    k = conv1x1(hn, params["wk"], params["bk"])
    v = conv1x1(hn, params["wv"], params["bv"])
    qt = jnp.transpose(q, (0, 2, 1))                          # (B, HW, C)
    w_ = jnp.einsum("bic,bcj->bij", qt, k) * (C ** -0.5)
    w_ = jax.nn.softmax(w_, axis=2)
    h_ = jnp.einsum("bcj,bij->bci", v, w_)                    # (B, C, HW)
    h_ = conv1x1(h_, params["wp"], params["bp"]).reshape(B, C, H, W)
    return x + h_


def init_params(key, C):
    ks = jax.random.split(key, 10)
    bound = 1.0 / jnp.sqrt(C)
    u = lambda k, shape: jax.random.uniform(k, shape, jnp.float32, -bound, bound)
    return {
        "gamma": 1.0 + 0.1 * jax.random.normal(ks[0], (C,), jnp.float32),
        "beta": 0.1 * jax.random.normal(ks[1], (C,), jnp.float32),
        "wq": u(ks[2], (C, C)), "bq": u(ks[3], (C,)),
        "wk": u(ks[4], (C, C)), "bk": u(ks[5], (C,)),
        "wv": u(ks[6], (C, C)), "bv": u(ks[7], (C,)),
        "wp": u(ks[8], (C, C)), "bp": u(ks[9], (C,)),
    }


if __name__ == "__main__":
    # GroupNorm(32) requires channels % 32 == 0.  HW=256 with TQ=TK=128
    # exercises 2 query tiles x 2 KV tiles of the flash loop.
    B, C, H, W = 2, 64, 16, 16
    key = jax.random.PRNGKey(0)
    kx, kp = jax.random.split(key)
    x = jax.random.normal(kx, (B, C, H, W), jnp.float32)
    params = init_params(kp, C)

    out = attn_block(x, params)
    out = jax.block_until_ready(out)

    ref = ref_attn_block(x, params)
    assert out.shape == x.shape and out.dtype == x.dtype
    err = float(jnp.max(jnp.abs(out - ref)))
    # bf16 MXU operands (f32 accumulation) -> relax tolerance vs pure-f32 ref.
    assert err < 5e-2, f"max abs err {err}"
    print("KERNEL_OK")
</pallas_src>

<mosaic_0001>
module attributes {stable_mosaic.version = 11 : i64} {
  func.func @kernel(%arg0: i32, %arg1: i32, %arg2: memref<1x256x64xf32, #tpu.memory_space<vmem>>, %arg3: memref<1x64xf32, #tpu.memory_space<vmem>>, %arg4: memref<1x64xf32, #tpu.memory_space<vmem>>, %arg5: memref<64x32xf32, #tpu.memory_space<vmem>>, %arg6: memref<64x64xbf16, #tpu.memory_space<vmem>>, %arg7: memref<1x64xf32, #tpu.memory_space<vmem>>, %arg8: memref<64x64xbf16, #tpu.memory_space<vmem>>, %arg9: memref<1x64xf32, #tpu.memory_space<vmem>>, %arg10: memref<64x64xbf16, #tpu.memory_space<vmem>>, %arg11: memref<1x64xf32, #tpu.memory_space<vmem>>, %arg12: memref<64x64xbf16, #tpu.memory_space<vmem>>, %arg13: memref<1x64xf32, #tpu.memory_space<vmem>>, %arg14: memref<1x128x64xf32, #tpu.memory_space<vmem>>, %arg15: memref<256x64xbf16, #tpu.memory_space<vmem>>, %arg16: memref<256x64xbf16, #tpu.memory_space<vmem>>, %arg17: memref<1x64xf32, #tpu.memory_space<vmem>>, %arg18: memref<1x64xf32, #tpu.memory_space<vmem>>, %arg19: memref<128x1xf32, #tpu.memory_space<vmem>>, %arg20: memref<128x1xf32, #tpu.memory_space<vmem>>, %arg21: memref<128x64xf32, #tpu.memory_space<vmem>>) attributes {dimension_semantics = [#tpu.dimension_semantics<parallel>, #tpu.dimension_semantics<arbitrary>], iteration_bounds = array<i64: 2, 2>, scalar_prefetch = 0 : i64, scratch_operands = 7 : i64, tpu.core_type = #tpu.core_type<tc>, window_params = [{transform_indices = @transform_0, window_bounds = array<i64: 1, 256, 64>}, {pipeline_mode = #tpu.pipeline_mode<synchronous>, transform_indices = @transform_1, window_bounds = array<i64: 1, 64>}, {pipeline_mode = #tpu.pipeline_mode<synchronous>, transform_indices = @transform_2, window_bounds = array<i64: 1, 64>}, {pipeline_mode = #tpu.pipeline_mode<synchronous>, transform_indices = @transform_3, window_bounds = array<i64: 64, 32>}, {pipeline_mode = #tpu.pipeline_mode<synchronous>, transform_indices = @transform_4, window_bounds = array<i64: 64, 64>}, {pipeline_mode = #tpu.pipeline_mode<synchronous>, transform_indices = @transform_5, window_bounds = array<i64: 1, 64>}, {pipeline_mode = #tpu.pipeline_mode<synchronous>, transform_indices = @transform_6, window_bounds = array<i64: 64, 64>}, {pipeline_mode = #tpu.pipeline_mode<synchronous>, transform_indices = @transform_7, window_bounds = array<i64: 1, 64>}, {pipeline_mode = #tpu.pipeline_mode<synchronous>, transform_indices = @transform_8, window_bounds = array<i64: 64, 64>}, {pipeline_mode = #tpu.pipeline_mode<synchronous>, transform_indices = @transform_9, window_bounds = array<i64: 1, 64>}, {pipeline_mode = #tpu.pipeline_mode<synchronous>, transform_indices = @transform_10, window_bounds = array<i64: 64, 64>}, {pipeline_mode = #tpu.pipeline_mode<synchronous>, transform_indices = @transform_11, window_bounds = array<i64: 1, 64>}, {transform_indices = @transform_12, window_bounds = array<i64: 1, 128, 64>}]} {
    %c0_i32 = arith.constant 0 : i32
    %0 = arith.cmpi eq, %arg1, %c0_i32 : i32
    %1 = arith.extui %0 : i1 to i32
    %c0_i32_0 = arith.constant 0 : i32
    %2 = arith.cmpi ne, %1, %c0_i32_0 : i32
    scf.if %2 {
      %c0_33 = arith.constant 0 : index
      %c0_34 = arith.constant 0 : index
      %c0_35 = arith.constant 0 : index
      %43 = vector.load %arg2[%c0_33, %c0_34, %c0_35] : memref<1x256x64xf32, #tpu.memory_space<vmem>>, vector<1x256x64xf32>
      %44 = vector.shape_cast %43 : vector<1x256x64xf32> to vector<256x64xf32>
      %cst_36 = arith.constant 1.000000e+00 : f32
      %45 = vector.broadcast %cst_36 : f32 to vector<1x256xf32>
      %cst_37 = arith.constant dense<0.000000e+00> : vector<1x64xf32>
      %46 = tpu.matmul %45, %44, %cst_37 {dimension_numbers = #tpu.dot_dimension_numbers<[1], [0], [0], [1], [0, 0, 1, 1], [], []>} : vector<1x256xf32>, vector<256x64xf32>, vector<1x64xf32> -> vector<1x64xf32>
      %47 = arith.mulf %44, %44 : vector<256x64xf32>
      %cst_38 = arith.constant dense<0.000000e+00> : vector<1x64xf32>
      %48 = tpu.matmul %45, %47, %cst_38 {dimension_numbers = #tpu.dot_dimension_numbers<[1], [0], [0], [1], [0, 0, 1, 1], [], []>} : vector<1x256xf32>, vector<256x64xf32>, vector<1x64xf32> -> vector<1x64xf32>
      %c0_39 = arith.constant 0 : index
      %c0_40 = arith.constant 0 : index
      %49 = vector.load %arg5[%c0_39, %c0_40] : memref<64x32xf32, #tpu.memory_space<vmem>>, vector<64x32xf32>
      %cst_41 = arith.constant dense<0.000000e+00> : vector<1x32xf32>
      %50 = tpu.matmul %46, %49, %cst_41 {dimension_numbers = #tpu.dot_dimension_numbers<[1], [0], [0], [1], [0, 0, 1, 1], [], []>} : vector<1x64xf32>, vector<64x32xf32>, vector<1x32xf32> -> vector<1x32xf32>
      %cst_42 = arith.constant 0.001953125 : f32
      %51 = vector.broadcast %cst_42 : f32 to vector<1x32xf32>
      %52 = arith.mulf %50, %51 : vector<1x32xf32>
      %cst_43 = arith.constant dense<0.000000e+00> : vector<1x32xf32>
      %53 = tpu.matmul %48, %49, %cst_43 {dimension_numbers = #tpu.dot_dimension_numbers<[1], [0], [0], [1], [0, 0, 1, 1], [], []>} : vector<1x64xf32>, vector<64x32xf32>, vector<1x32xf32> -> vector<1x32xf32>
      %cst_44 = arith.constant 0.001953125 : f32
      %54 = vector.broadcast %cst_44 : f32 to vector<1x32xf32>
      %55 = arith.mulf %53, %54 : vector<1x32xf32>
      %56 = arith.mulf %52, %52 : vector<1x32xf32>
      %57 = arith.subf %55, %56 : vector<1x32xf32>
      %cst_45 = arith.constant 0.000000e+00 : f32
      %58 = vector.broadcast %cst_45 : f32 to vector<1x32xf32>
      %59 = arith.maximumf %57, %58 : vector<1x32xf32>
      %cst_46 = arith.constant dense<0.000000e+00> : vector<1x64xf32>
      %60 = tpu.matmul %52, %49, %cst_46 {dimension_numbers = #tpu.dot_dimension_numbers<[1], [1], [0], [0], [0, 0, 1, 0], [], []>} : vector<1x32xf32>, vector<64x32xf32>, vector<1x64xf32> -> vector<1x64xf32>
      %cst_47 = arith.constant dense<0.000000e+00> : vector<1x64xf32>
      %61 = tpu.matmul %59, %49, %cst_47 {dimension_numbers = #tpu.dot_dimension_numbers<[1], [1], [0], [0], [0, 0, 1, 0], [], []>} : vector<1x32xf32>, vector<64x32xf32>, vector<1x64xf32> -> vector<1x64xf32>
      %c0_48 = arith.constant 0 : index
      %c0_49 = arith.constant 0 : index
      %62 = vector.load %arg3[%c0_48, %c0_49] : memref<1x64xf32, #tpu.memory_space<vmem>>, vector<1x64xf32>
      %cst_50 = arith.constant 9.99999997E-7 : f32
      %63 = vector.broadcast %cst_50 : f32 to vector<1x64xf32>
      %64 = arith.addf %61, %63 : vector<1x64xf32>
      %65 = math.rsqrt %64 : vector<1x64xf32>
      %66 = arith.mulf %62, %65 : vector<1x64xf32>
      %c0_51 = arith.constant 0 : index
      %c0_52 = arith.constant 0 : index
      %67 = vector.load %arg4[%c0_51, %c0_52] : memref<1x64xf32, #tpu.memory_space<vmem>>, vector<1x64xf32>
      %68 = arith.mulf %60, %66 : vector<1x64xf32>
      %69 = arith.subf %67, %68 : vector<1x64xf32>
      %c0_53 = arith.constant 0 : index
      %c0_54 = arith.constant 0 : index
      %70 = vector.load %arg17[%c0_53, %c0_54] : memref<1x64xf32, #tpu.memory_space<vmem>>, vector<1x64xf32>
      tpu.vector_store %arg17[%c0_53, %c0_54], %66 {strides = array<i32>} : memref<1x64xf32, #tpu.memory_space<vmem>>, vector<1x64xf32>,
      %c0_55 = arith.constant 0 : index
      %c0_56 = arith.constant 0 : index
      %71 = vector.load %arg18[%c0_55, %c0_56] : memref<1x64xf32, #tpu.memory_space<vmem>>, vector<1x64xf32>
      tpu.vector_store %arg18[%c0_55, %c0_56], %69 {strides = array<i32>} : memref<1x64xf32, #tpu.memory_space<vmem>>, vector<1x64xf32>,
      %72 = vector.broadcast %66 : vector<1x64xf32> to vector<256x64xf32>
      %73 = arith.mulf %44, %72 : vector<256x64xf32>
      %74 = vector.broadcast %69 : vector<1x64xf32> to vector<256x64xf32>
      %75 = arith.addf %73, %74 : vector<256x64xf32>
      %76 = arith.truncf %75 : vector<256x64xf32> to vector<256x64xbf16>
      %c0_57 = arith.constant 0 : index
      %c0_58 = arith.constant 0 : index
      %77 = vector.load %arg8[%c0_57, %c0_58] : memref<64x64xbf16, #tpu.memory_space<vmem>>, vector<64x64xbf16>
      %cst_59 = arith.constant dense<0.000000e+00> : vector<256x64xf32>
      %78 = tpu.matmul %76, %77, %cst_59 {dimension_numbers = #tpu.dot_dimension_numbers<[1], [0], [0], [1], [0, 0, 1, 1], [], []>} : vector<256x64xbf16>, vector<64x64xbf16>, vector<256x64xf32> -> vector<256x64xf32>
      %c0_60 = arith.constant 0 : index
      %c0_61 = arith.constant 0 : index
      %79 = vector.load %arg9[%c0_60, %c0_61] : memref<1x64xf32, #tpu.memory_space<vmem>>, vector<1x64xf32>
      %80 = vector.broadcast %79 : vector<1x64xf32> to vector<256x64xf32>
      %81 = arith.addf %78, %80 : vector<256x64xf32>
      %82 = arith.truncf %81 : vector<256x64xf32> to vector<256x64xbf16>
      %c0_62 = arith.constant 0 : index
      %c0_63 = arith.constant 0 : index
      %83 = vector.load %arg15[%c0_62, %c0_63] : memref<256x64xbf16, #tpu.memory_space<vmem>>, vector<256x64xbf16>
      tpu.vector_store %arg15[%c0_62, %c0_63], %82 {strides = array<i32>} : memref<256x64xbf16, #tpu.memory_space<vmem>>, vector<256x64xbf16>,
      %c0_64 = arith.constant 0 : index
      %c0_65 = arith.constant 0 : index
      %84 = vector.load %arg10[%c0_64, %c0_65] : memref<64x64xbf16, #tpu.memory_space<vmem>>, vector<64x64xbf16>
      %cst_66 = arith.constant dense<0.000000e+00> : vector<256x64xf32>
      %85 = tpu.matmul %76, %84, %cst_66 {dimension_numbers = #tpu.dot_dimension_numbers<[1], [0], [0], [1], [0, 0, 1, 1], [], []>} : vector<256x64xbf16>, vector<64x64xbf16>, vector<256x64xf32> -> vector<256x64xf32>
      %c0_67 = arith.constant 0 : index
      %c0_68 = arith.constant 0 : index
      %86 = vector.load %arg11[%c0_67, %c0_68] : memref<1x64xf32, #tpu.memory_space<vmem>>, vector<1x64xf32>
      %87 = vector.broadcast %86 : vector<1x64xf32> to vector<256x64xf32>
      %88 = arith.addf %85, %87 : vector<256x64xf32>
      %89 = arith.truncf %88 : vector<256x64xf32> to vector<256x64xbf16>
      %c0_69 = arith.constant 0 : index
      %c0_70 = arith.constant 0 : index
      %90 = vector.load %arg16[%c0_69, %c0_70] : memref<256x64xbf16, #tpu.memory_space<vmem>>, vector<256x64xbf16>
      tpu.vector_store %arg16[%c0_69, %c0_70], %89 {strides = array<i32>} : memref<256x64xbf16, #tpu.memory_space<vmem>>, vector<256x64xbf16>,
    } else {
    }
    %c128_i32 = arith.constant 128 : i32
    %3 = arith.muli %arg1, %c128_i32 : i32
    %4 = tpu.assume_multiple %3, 128 : i32
    %c0 = arith.constant 0 : index
    %5 = arith.index_cast %4 : i32 to index
    %c0_1 = arith.constant 0 : index
    %6 = vector.load %arg2[%c0, %5, %c0_1] : memref<1x256x64xf32, #tpu.memory_space<vmem>>, vector<1x128x64xf32>
    %7 = vector.shape_cast %6 : vector<1x128x64xf32> to vector<128x64xf32>
    %c0_2 = arith.constant 0 : index
    %c0_3 = arith.constant 0 : index
    %8 = vector.load %arg17[%c0_2, %c0_3] : memref<1x64xf32, #tpu.memory_space<vmem>>, vector<1x64xf32>
    %9 = vector.broadcast %8 : vector<1x64xf32> to vector<128x64xf32>
    %10 = arith.mulf %7, %9 : vector<128x64xf32>
    %c0_4 = arith.constant 0 : index
    %c0_5 = arith.constant 0 : index
    %11 = vector.load %arg18[%c0_4, %c0_5] : memref<1x64xf32, #tpu.memory_space<vmem>>, vector<1x64xf32>
    %12 = vector.broadcast %11 : vector<1x64xf32> to vector<128x64xf32>
    %13 = arith.addf %10, %12 : vector<128x64xf32>
    %14 = arith.truncf %13 : vector<128x64xf32> to vector<128x64xbf16>
    %c0_6 = arith.constant 0 : index
    %c0_7 = arith.constant 0 : index
    %15 = vector.load %arg6[%c0_6, %c0_7] : memref<64x64xbf16, #tpu.memory_space<vmem>>, vector<64x64xbf16>
    %cst = arith.constant dense<0.000000e+00> : vector<128x64xf32>
    %16 = tpu.matmul %14, %15, %cst {dimension_numbers = #tpu.dot_dimension_numbers<[1], [0], [0], [1], [0, 0, 1, 1], [], []>} : vector<128x64xbf16>, vector<64x64xbf16>, vector<128x64xf32> -> vector<128x64xf32>
    %c0_8 = arith.constant 0 : index
    %c0_9 = arith.constant 0 : index
    %17 = vector.load %arg7[%c0_8, %c0_9] : memref<1x64xf32, #tpu.memory_space<vmem>>, vector<1x64xf32>
    %18 = vector.broadcast %17 : vector<1x64xf32> to vector<128x64xf32>
    %19 = arith.addf %16, %18 : vector<128x64xf32>
    %20 = arith.truncf %19 : vector<128x64xf32> to vector<128x64xbf16>
    %cst_10 = arith.constant 0xFF800000 : f32
    %21 = vector.broadcast %cst_10 : f32 to vector<128x1xf32>
    %c0_11 = arith.constant 0 : index
    %c0_12 = arith.constant 0 : index
    %22 = vector.load %arg19[%c0_11, %c0_12] : memref<128x1xf32, #tpu.memory_space<vmem>>, vector<128x1xf32>
    tpu.vector_store %arg19[%c0_11, %c0_12], %21 {strides = array<i32>} : memref<128x1xf32, #tpu.memory_space<vmem>>, vector<128x1xf32>,
    %cst_13 = arith.constant 0.000000e+00 : f32
    %23 = vector.broadcast %cst_13 : f32 to vector<128x1xf32>
    %c0_14 = arith.constant 0 : index
    %c0_15 = arith.constant 0 : index
    %24 = vector.load %arg20[%c0_14, %c0_15] : memref<128x1xf32, #tpu.memory_space<vmem>>, vector<128x1xf32>
    tpu.vector_store %arg20[%c0_14, %c0_15], %23 {strides = array<i32>} : memref<128x1xf32, #tpu.memory_space<vmem>>, vector<128x1xf32>,
    %cst_16 = arith.constant 0.000000e+00 : f32
    %25 = vector.broadcast %cst_16 : f32 to vector<128x64xf32>
    %c0_17 = arith.constant 0 : index
    %c0_18 = arith.constant 0 : index
    %26 = vector.load %arg21[%c0_17, %c0_18] : memref<128x64xf32, #tpu.memory_space<vmem>>, vector<128x64xf32>
    tpu.vector_store %arg21[%c0_17, %c0_18], %25 {strides = array<i32>} : memref<128x64xf32, #tpu.memory_space<vmem>>, vector<128x64xf32>,
    %c0_i32_19 = arith.constant 0 : i32
    %c2_i32 = arith.constant 2 : i32
    %27 = arith.addi %c0_i32_19, %c2_i32 : i32
    %c1_i32 = arith.constant 1 : i32
    scf.for %arg22 = %c0_i32_19 to %27 step %c1_i32  : i32 {
      %c1_i32_33 = arith.constant 1 : i32
      %43 = arith.muli %arg22, %c1_i32_33 : i32
      %c0_i32_34 = arith.constant 0 : i32
      %44 = arith.addi %c0_i32_34, %43 : i32
      %c128_i32_35 = arith.constant 128 : i32
      %45 = arith.muli %44, %c128_i32_35 : i32
      %46 = tpu.assume_multiple %45, 128 : i32
      %47 = arith.index_cast %46 : i32 to index
      %c0_36 = arith.constant 0 : index
      %48 = vector.load %arg15[%47, %c0_36] : memref<256x64xbf16, #tpu.memory_space<vmem>>, vector<128x64xbf16>
      %49 = arith.index_cast %46 : i32 to index
      %c0_37 = arith.constant 0 : index
      %50 = vector.load %arg16[%49, %c0_37] : memref<256x64xbf16, #tpu.memory_space<vmem>>, vector<128x64xbf16>
      %cst_38 = arith.constant dense<0.000000e+00> : vector<128x128xf32>
      %51 = tpu.matmul %20, %48, %cst_38 {dimension_numbers = #tpu.dot_dimension_numbers<[1], [1], [0], [0], [0, 0, 1, 0], [], []>} : vector<128x64xbf16>, vector<128x64xbf16>, vector<128x128xf32> -> vector<128x128xf32>
      %c0_39 = arith.constant 0 : index
      %c0_40 = arith.constant 0 : index
      %52 = vector.load %arg19[%c0_39, %c0_40] : memref<128x1xf32, #tpu.memory_space<vmem>>, vector<128x1xf32>
      %cst_41 = arith.constant dense<0xFF800000> : vector<128xf32>
      %53 = vector.multi_reduction <maximumf>, %51, %cst_41 [1] : vector<128x128xf32> to vector<128xf32>
      %54 = vector.shape_cast %53 : vector<128xf32> to vector<128x1xf32>
      %55 = arith.maximumf %52, %54 : vector<128x1xf32>
      %56 = arith.subf %52, %55 : vector<128x1xf32>
      %57 = math.exp %56 : vector<128x1xf32>
      %58 = vector.broadcast %55 : vector<128x1xf32> to vector<128x128xf32>
      %59 = arith.subf %51, %58 : vector<128x128xf32>
      %60 = math.exp %59 : vector<128x128xf32>
      %c0_42 = arith.constant 0 : index
      %c0_43 = arith.constant 0 : index
      %61 = vector.load %arg20[%c0_42, %c0_43] : memref<128x1xf32, #tpu.memory_space<vmem>>, vector<128x1xf32>
      %62 = arith.mulf %57, %61 : vector<128x1xf32>
      %cst_44 = arith.constant dense<0.000000e+00> : vector<128xf32>
      %63 = vector.multi_reduction <add>, %60, %cst_44 [1] : vector<128x128xf32> to vector<128xf32>
      %64 = vector.shape_cast %63 : vector<128xf32> to vector<128x1xf32>
      %65 = arith.addf %62, %64 : vector<128x1xf32>
      %c0_45 = arith.constant 0 : index
      %c0_46 = arith.constant 0 : index
      %66 = vector.load %arg20[%c0_45, %c0_46] : memref<128x1xf32, #tpu.memory_space<vmem>>, vector<128x1xf32>
      tpu.vector_store %arg20[%c0_45, %c0_46], %65 {strides = array<i32>} : memref<128x1xf32, #tpu.memory_space<vmem>>, vector<128x1xf32>,
      %c0_47 = arith.constant 0 : index
      %c0_48 = arith.constant 0 : index
      %67 = vector.load %arg21[%c0_47, %c0_48] : memref<128x64xf32, #tpu.memory_space<vmem>>, vector<128x64xf32>
      %68 = vector.broadcast %57 : vector<128x1xf32> to vector<128x64xf32>
      %69 = arith.mulf %68, %67 : vector<128x64xf32>
      %70 = arith.truncf %60 : vector<128x128xf32> to vector<128x128xbf16>
      %cst_49 = arith.constant dense<0.000000e+00> : vector<128x64xf32>
      %71 = tpu.matmul %70, %50, %cst_49 {dimension_numbers = #tpu.dot_dimension_numbers<[1], [0], [0], [1], [0, 0, 1, 1], [], []>} : vector<128x128xbf16>, vector<128x64xbf16>, vector<128x64xf32> -> vector<128x64xf32>
      %72 = arith.addf %69, %71 : vector<128x64xf32>
      %c0_50 = arith.constant 0 : index
      %c0_51 = arith.constant 0 : index
      %73 = vector.load %arg21[%c0_50, %c0_51] : memref<128x64xf32, #tpu.memory_space<vmem>>, vector<128x64xf32>
      tpu.vector_store %arg21[%c0_50, %c0_51], %72 {strides = array<i32>} : memref<128x64xf32, #tpu.memory_space<vmem>>, vector<128x64xf32>,
      %c0_52 = arith.constant 0 : index
      %c0_53 = arith.constant 0 : index
      %74 = vector.load %arg19[%c0_52, %c0_53] : memref<128x1xf32, #tpu.memory_space<vmem>>, vector<128x1xf32>
      tpu.vector_store %arg19[%c0_52, %c0_53], %55 {strides = array<i32>} : memref<128x1xf32, #tpu.memory_space<vmem>>, vector<128x1xf32>,
    }
    %c2_i32_20 = arith.constant 2 : i32
    %c0_21 = arith.constant 0 : index
    %c0_22 = arith.constant 0 : index
    %28 = vector.load %arg21[%c0_21, %c0_22] : memref<128x64xf32, #tpu.memory_space<vmem>>, vector<128x64xf32>
    %c0_23 = arith.constant 0 : index
    %c0_24 = arith.constant 0 : index
    %29 = vector.load %arg20[%c0_23, %c0_24] : memref<128x1xf32, #tpu.memory_space<vmem>>, vector<128x1xf32>
    %30 = tpu.reciprocal %29 {approx = true} : vector<128x1xf32> -> vector<128x1xf32>
    %31 = vector.broadcast %30 : vector<128x1xf32> to vector<128x64xf32>
    %32 = arith.mulf %28, %31 : vector<128x64xf32>
    %33 = arith.truncf %32 : vector<128x64xf32> to vector<128x64xbf16>
    %c0_25 = arith.constant 0 : index
    %c0_26 = arith.constant 0 : index
    %34 = vector.load %arg12[%c0_25, %c0_26] : memref<64x64xbf16, #tpu.memory_space<vmem>>, vector<64x64xbf16>
    %cst_27 = arith.constant dense<0.000000e+00> : vector<128x64xf32>
    %35 = tpu.matmul %33, %34, %cst_27 {dimension_numbers = #tpu.dot_dimension_numbers<[1], [0], [0], [1], [0, 0, 1, 1], [], []>} : vector<128x64xbf16>, vector<64x64xbf16>, vector<128x64xf32> -> vector<128x64xf32>
    %c0_28 = arith.constant 0 : index
    %c0_29 = arith.constant 0 : index
    %36 = vector.load %arg13[%c0_28, %c0_29] : memref<1x64xf32, #tpu.memory_space<vmem>>, vector<1x64xf32>
    %37 = vector.broadcast %36 : vector<1x64xf32> to vector<128x64xf32>
    %38 = arith.addf %35, %37 : vector<128x64xf32>
    %39 = arith.addf %7, %38 : vector<128x64xf32>
    %c0_30 = arith.constant 0 : index
    %c0_31 = arith.constant 0 : index
    %c0_32 = arith.constant 0 : index
    %40 = vector.load %arg14[%c0_30, %c0_31, %c0_32] : memref<1x128x64xf32, #tpu.memory_space<vmem>>, vector<1x128x64xf32>
    %41 = vector.shape_cast %40 : vector<1x128x64xf32> to vector<128x64xf32>
    %42 = vector.shape_cast %39 : vector<128x64xf32> to vector<1x128x64xf32>
    tpu.vector_store %arg14[%c0_30, %c0_31, %c0_32], %42 {strides = array<i32>} : memref<1x128x64xf32, #tpu.memory_space<vmem>>, vector<1x128x64xf32>,
    return
  }
  func.func @transform_0(%arg0: i32, %arg1: i32) -> (i32, i32, i32) {
    %c0_i32 = arith.constant 0 : i32
    %c0_i32_0 = arith.constant 0 : i32
    %c0_i32_1 = arith.constant 0 : i32
    return %arg0, %c0_i32, %c0_i32_0 : i32, i32, i32
  }
  func.func @transform_1(%arg0: i32, %arg1: i32) -> (i32, i32) {
    %c0_i32 = arith.constant 0 : i32
    %c0_i32_0 = arith.constant 0 : i32
    %c0_i32_1 = arith.constant 0 : i32
    return %c0_i32, %c0_i32_0 : i32, i32
  }
  func.func @transform_2(%arg0: i32, %arg1: i32) -> (i32, i32) {
    %c0_i32 = arith.constant 0 : i32
    %c0_i32_0 = arith.constant 0 : i32
    %c0_i32_1 = arith.constant 0 : i32
    return %c0_i32, %c0_i32_0 : i32, i32
  }
  func.func @transform_3(%arg0: i32, %arg1: i32) -> (i32, i32) {
    %c0_i32 = arith.constant 0 : i32
    %c0_i32_0 = arith.constant 0 : i32
    %c0_i32_1 = arith.constant 0 : i32
    return %c0_i32, %c0_i32_0 : i32, i32
  }
  func.func @transform_4(%arg0: i32, %arg1: i32) -> (i32, i32) {
    %c0_i32 = arith.constant 0 : i32
    %c0_i32_0 = arith.constant 0 : i32
    %c0_i32_1 = arith.constant 0 : i32
    return %c0_i32, %c0_i32_0 : i32, i32
  }
  func.func @transform_5(%arg0: i32, %arg1: i32) -> (i32, i32) {
    %c0_i32 = arith.constant 0 : i32
    %c0_i32_0 = arith.constant 0 : i32
    %c0_i32_1 = arith.constant 0 : i32
    return %c0_i32, %c0_i32_0 : i32, i32
  }
  func.func @transform_6(%arg0: i32, %arg1: i32) -> (i32, i32) {
    %c0_i32 = arith.constant 0 : i32
    %c0_i32_0 = arith.constant 0 : i32
    %c0_i32_1 = arith.constant 0 : i32
    return %c0_i32, %c0_i32_0 : i32, i32
  }
  func.func @transform_7(%arg0: i32, %arg1: i32) -> (i32, i32) {
    %c0_i32 = arith.constant 0 : i32
    %c0_i32_0 = arith.constant 0 : i32
    %c0_i32_1 = arith.constant 0 : i32
    return %c0_i32, %c0_i32_0 : i32, i32
  }
  func.func @transform_8(%arg0: i32, %arg1: i32) -> (i32, i32) {
    %c0_i32 = arith.constant 0 : i32
    %c0_i32_0 = arith.constant 0 : i32
    %c0_i32_1 = arith.constant 0 : i32
    return %c0_i32, %c0_i32_0 : i32, i32
  }
  func.func @transform_9(%arg0: i32, %arg1: i32) -> (i32, i32) {
    %c0_i32 = arith.constant 0 : i32
    %c0_i32_0 = arith.constant 0 : i32
    %c0_i32_1 = arith.constant 0 : i32
    return %c0_i32, %c0_i32_0 : i32, i32
  }
  func.func @transform_10(%arg0: i32, %arg1: i32) -> (i32, i32) {
    %c0_i32 = arith.constant 0 : i32
    %c0_i32_0 = arith.constant 0 : i32
    %c0_i32_1 = arith.constant 0 : i32
    return %c0_i32, %c0_i32_0 : i32, i32
  }
  func.func @transform_11(%arg0: i32, %arg1: i32) -> (i32, i32) {
    %c0_i32 = arith.constant 0 : i32
    %c0_i32_0 = arith.constant 0 : i32
    %c0_i32_1 = arith.constant 0 : i32
    return %c0_i32, %c0_i32_0 : i32, i32
  }
  func.func @transform_12(%arg0: i32, %arg1: i32) -> (i32, i32, i32) {
    %c0_i32 = arith.constant 0 : i32
    %c0_i32_0 = arith.constant 0 : i32
    return %arg0, %arg1, %c0_i32 : i32, i32, i32
  }
}

</mosaic_0001>

<bundles_post_ra>
// kernel: tpu_custom_call.1
= control target key start
LH: loop header
LB: loop body
LE: loop exit
PB: predicated region body
PF: predicated region fallthrough
CT: control target
= control target key end

     0   :  { %s4119_s21 = smov 0   ;;  %s4121_s22 = smov 0   ;;  %s5401_s0 = inlined_call_operand.vmem [shape: f32[2,256,64], index: 0, kind: input, shape index: {}]   ;;  %s5402_s1 = inlined_call_operand.vmem [shape: f32[1,64], index: 1, kind: input, shape index: {}]   ;;  %s5403_s2 = inlined_call_operand.vmem [shape: f32[1,64], index: 2, kind: input, shape index: {}]   ;;  %s5404_s3 = inlined_call_operand.vmem [shape: f32[64,32], index: 3, kind: input, shape index: {}]   ;;  %s5405_s4 = inlined_call_operand.vmem [shape: bf16[64,64], index: 4, kind: input, shape index: {}]   ;;  %s5406_s5 = inlined_call_operand.vmem [shape: f32[1,64], index: 5, kind: input, shape index: {}]   ;;  %s5407_s6 = inlined_call_operand.vmem [shape: bf16[64,64], index: 6, kind: input, shape index: {}]   ;;  %s5408_s7 = inlined_call_operand.vmem [shape: f32[1,64], index: 7, kind: input, shape index: {}]   ;;  %s5409_s8 = inlined_call_operand.vmem [shape: bf16[64,64], index: 8, kind: input, shape index: {}]   ;;  %s5410_s9 = inlined_call_operand.vmem [shape: f32[1,64], index: 9, kind: input, shape index: {}]   ;;  %s5411_s10 = inlined_call_operand.vmem [shape: bf16[64,64], index: 10, kind: input, shape index: {}]   ;;  %s5412_s11 = inlined_call_operand.vmem [shape: f32[1,64], index: 11, kind: input, shape index: {}]   ;;  %s5413_s12 = inlined_call_operand.vmem [shape: f32[2,256,64], index: 12, kind: output, shape index: {}]  }
   0x1   :  { %s4123_s23 = smov 0   ;;  %s4125_s24 = smov 0  }
   0x2   :  { %s4127_s25 = smov 0  }
   0x3 LB: > { %s31_s26 = sadd.s32 1, %s4032_s23  ;;  %s34_s27 = sadd.s32 1, %s4036_s24  ;;  %s4040_s25 = sphi %s4127_s25, %s22_s25   ;;  %s4036_s24 = sphi %s4125_s24, %s5487_s24   ;;  %s4032_s23 = sphi %s4123_s23, %s5486_s23   ;;  %s4028_s22 = sphi %s4121_s22, %s5485_s22   ;;  %s4024_s21 = sphi %s4119_s21, %s5484_s21  }
   0x4   : > { %p32_p0 = scmp.ge.s32.totalorder %s31_s26, 2  ;;  %p3098_p1 = scmp.ge.s32.totalorder %s4040_s25, 1 }
   0x5   : > { %p376_p2 = scmp.lt.s32.totalorder %s4040_s25, 5 }
   0x6   : > { %s5489_s26 = smov (%p32_p0, %s31_s26), 0  ;;  %s5491_s27 = smov (!%p32_p0, %s34_s27), %s4036_s24 }
   0x7   : > { %p377_p3 = pnand %p3098_p1, %p376_p2  ;;  %p36_p4 = scmp.ge.s32.totalorder %s5491_s27, 2 }
   0x9   : > { %s5493_s27 = smov (%p36_p4, %s5491_s27), 0  ;;  %380 = sbr.rel (%p377_p3) target bundleno = 2444 (0x98c), region = 68 }
  0x10   : > { %p422_p5 = scmp.lt.s32.totalorder %s4028_s22, 1  ;;  %s3101_s28 = sshll.u32 %s4024_s21, 4 }
  0x11   : > { %p430_p6 = scmp.lt.s32.totalorder %s3101_s28, 31  ;;  %p3104_p7 = scmp.ne.s32.totalorder %s4024_s21, 0 }
  0x12   : > { %s5495_s22 = smov (!%p422_p5, %s4028_s22), 1  ;;  %v4046_v10 = vmov (!%p3104_p7), 1.0   ;;  %vm4048_vm0 = vmmov (!%p3104_p7), 0   ;;  %vm806_vm1 = vcmask (!%p3104_p7), 261120   ;;  %vm654_vm2 = vcmask (!%p3104_p7), 523264  }
  0x13   : > { %s5497_s28 = smov (!%p430_p6, %s3101_s28), 31  ;;  %s3209_s29 = sshll.u32 %s5495_s22, 8  ;;  %538 = vmatprep.mubr.f32.mxu0 (!%p3104_p7), %v4046_v10  ;;  %640 = vmatprep.mubr.f32.mxu1 (!%p3104_p7), %v4046_v10  ;;  %vm4387_vm3 = vmpackc.low (!%p3104_p7), %vm806_vm1, %vm806_vm1  ;;  %vm983_vm4 = vcmask (!%p3104_p7), 516096  }
  0x14   : > { %s3102_s30 = sshll.u32 %s5495_s22, 5  ;;  %s4155_s15 = scalar_lea.vmem %s5401_s0, %s3209_s29 }
  0x15   : > { %s433_s16 = sadd.s32 %s3102_s30, %s5497_s28  ;;  %441 = sbr.rel (%p3104_p7) target bundleno = 1009 (0x3f1), region = 72  ;;  %v4164_v0 = vld [vmem:[%s4155_s15 + $0x80] sm:$0xff] (!%p3104_p7)  ;;  %v4167_v1 = vld [vmem:[%s4155_s15 + $0x88] sm:$0xff] (!%p3104_p7)  ;;  %v4184_v8 = vld [vmem:[%s4155_s15 + $0x90] sm:$0xff] (!%p3104_p7) }
  0x16   : > { %s3103_s17 = sshll.u32 %s433_s16, 3  ;;  %v4170_v2 = vld [vmem:[%s4155_s15] sm:$0xff] (!%p3104_p7)  ;;  %v3680_v3 = vpack.c.bf16 (!%p3104_p7), %v4167_v1, %v4164_v0  ;;  %v4175_v4 = vld [vmem:[%s4155_s15 + $0x8] sm:$0xff] (!%p3104_p7)  ;;  %v560_v5 = vmul.f32 (!%p3104_p7), %v4164_v0, %v4164_v0  ;;  %v561_v6 = vmul.f32 (!%p3104_p7), %v4167_v1, %v4167_v1  ;;  %v4187_v9 = vld [vmem:[%s4155_s15 + $0x98] sm:$0xff] (!%p3104_p7)  ;;  %v562_v16 = vmul.f32 (!%p3104_p7), %v4184_v8, %v4184_v8 }
  0x17   : > { %s4160_s20 = scalar_lea.vmem %s5413_s12, %s3103_s17  ;;  %v544_v7 = vmul.f32 (!%p3104_p7), %v4170_v2, %v4170_v2  ;;  %v3682_v11 = vpack.c.bf16 (!%p3104_p7), %v4175_v4, %v4170_v2  ;;  %v545_v12 = vmul.f32 (!%p3104_p7), %v4175_v4, %v4175_v4  ;;  %v3684_v13 = vpack.c.bf16 (!%p3104_p7), %v4187_v9, %v4184_v8  ;;  %v4197_v14 = vld [vmem:[%s4155_s15 + $0x10] sm:$0xff] (!%p3104_p7)  ;;  %v4200_v15 = vld [vmem:[%s4155_s15 + $0x18] sm:$0xff] (!%p3104_p7)  ;;  %v4205_v17 = vld [vmem:[%s4155_s15 + $0xa0] sm:$0xff] (!%p3104_p7) }
  0x18   : > { %3681 = vmatprep.subr.bf16.mxu0 (!%p3104_p7), %v3680_v3  ;;  %v3712_v18 = vpack.c.bf16 (!%p3104_p7), %v561_v6, %v560_v5  ;;  %v563_v19 = vmul.f32 (!%p3104_p7), %v4187_v9, %v4187_v9  ;;  %v546_v20 = vmul.f32 (!%p3104_p7), %v4197_v14, %v4197_v14  ;;  %v4213_v21 = vld [vmem:[%s4155_s15 + $0xa8] sm:$0xff] (!%p3104_p7)  ;;  %v4216_v22 = vld [vmem:[%s4155_s15 + $0x20] sm:$0xff] (!%p3104_p7)  ;;  %v3686_v25 = vpack.c.bf16 (!%p3104_p7), %v4200_v15, %v4197_v14  ;;  %v4228_v28 = vld [vmem:[%s4155_s15 + $0xb0] sm:$0xff] (!%p3104_p7) }
  0x19   : > { %v4219_v23 = vld [vmem:[%s4155_s15 + $0x28] sm:$0xff] (!%p3104_p7)  ;;  %3683 = vmatpush3.bf16.msra.mxu0 (!%p3104_p7), %v3682_v11  ;;  %v3714_v24 = vpack.c.bf16 (!%p3104_p7), %v545_v12, %v544_v7  ;;  %v547_v26 = vmul.f32 (!%p3104_p7), %v4200_v15, %v4200_v15  ;;  %v3688_v27 = vpack.c.bf16 (!%p3104_p7), %v4213_v21, %v4205_v17  ;;  %v4231_v29 = vld [vmem:[%s4155_s15 + $0xb8] sm:$0xff] (!%p3104_p7)  ;;  %v564_v31 = vmul.f32 (!%p3104_p7), %v4205_v17, %v4205_v17  ;;  %v4242_v37 = vld [vmem:[%s4155_s15 + $0x30] sm:$0xff] (!%p3104_p7) }
  0x1a   : > { %3713 = vmatprep.subr.bf16.mxu1 (!%p3104_p7), %v3712_v18  ;;  %3685 = vmatprep.subr.bf16.mxu0 (!%p3104_p7), %v3684_v13  ;;  %v3716_v30 = vpack.c.bf16 (!%p3104_p7), %v563_v19, %v562_v16  ;;  %v565_v32 = vmul.f32 (!%p3104_p7), %v4213_v21, %v4213_v21  ;;  %v548_v34 = vmul.f32 (!%p3104_p7), %v4216_v22, %v4216_v22  ;;  %v4245_v38 = vld [vmem:[%s4155_s15 + $0x38] sm:$0xff] (!%p3104_p7)  ;;  %v4254_v42 = vld [vmem:[%s4155_s15 + $0xc0] sm:$0xff] (!%p3104_p7)  ;;  %v4257_v43 = vld [vmem:[%s4155_s15 + $0xc8] sm:$0xff] (!%p3104_p7) }
  0x1b   : > { %3715 = vmatpush3.bf16.msra.mxu1 (!%p3104_p7), %v3714_v24  ;;  %v3718_v33 = vpack.c.bf16 (!%p3104_p7), %v547_v26, %v546_v20  ;;  %v549_v35 = vmul.f32 (!%p3104_p7), %v4219_v23, %v4219_v23  ;;  %v566_v39 = vmul.f32 (!%p3104_p7), %v4228_v28, %v4228_v28  ;;  %v567_v40 = vmul.f32 (!%p3104_p7), %v4231_v29, %v4231_v29  ;;  %v4266_v49 = vld [vmem:[%s4155_s15 + $0x40] sm:$0xff] (!%p3104_p7)  ;;  %v4269_v50 = vld [vmem:[%s4155_s15 + $0x48] sm:$0xff] (!%p3104_p7)  ;;  %v4278_v54 = vld [vmem:[%s4155_s15 + $0xd0] sm:$0xff] (!%p3104_p7) }
  0x1c   : > { %3717 = vmatprep.subr.bf16.mxu1 %v3716_v30  ;;  %v3720_v36 = vpack.c.bf16 %v565_v32, %v564_v31  ;;  %v3690_v41 = vpack.c.bf16 %v4219_v23, %v4216_v22  ;;  %v3692_v44 = vpack.c.bf16 %v4231_v29, %v4228_v28  ;;  %v550_v46 = vmul.f32 %v4242_v37, %v4242_v37  ;;  %v4281_v55 = vld [vmem:[%s4155_s15 + $0xd8] sm:$0xff]  ;;  %v4286_v57 = vld [vmem:[%s4155_s15 + $0x50] sm:$0xff]  ;;  %v4296_v62 = vld [vmem:[%s4155_s15 + $0xe0] sm:$0xff] }
  0x1d   : > { %3687 = vmatpush3.bf16.msra.mxu0 %v3686_v25  ;;  %v3722_v45 = vpack.c.bf16 %v549_v35, %v548_v34  ;;  %v551_v47 = vmul.f32 %v4245_v38, %v4245_v38  ;;  %v3724_v48 = vpack.c.bf16 %v567_v40, %v566_v39  ;;  %v568_v51 = vmul.f32 %v4254_v42, %v4254_v42  ;;  %v4289_v58 = vld [vmem:[%s4155_s15 + $0x58] sm:$0xff]  ;;  %v4299_v63 = vld [vmem:[%s4155_s15 + $0xe8] sm:$0xff]  ;;  %v4314_v19 = vld [vmem:[%s4155_s15 + $0x60] sm:$0xff] }
  0x1e   : > { %3689 = vmatprep.subr.bf16.mxu0 %v3688_v27  ;;  %v569_v52 = vmul.f32 %v4257_v43, %v4257_v43  ;;  %v3694_v53 = vpack.c.bf16 %v4245_v38, %v4242_v37  ;;  %v3696_v56 = vpack.c.bf16 %v4257_v43, %v4254_v42  ;;  %v552_v60 = vmul.f32 %v4266_v49, %v4266_v49  ;;  %v4317_v20 = vld [vmem:[%s4155_s15 + $0x68] sm:$0xff]  ;;  %v4326_v27 = vld [vmem:[%s4155_s15 + $0xf0] sm:$0xff]  ;;  %v4329_v30 = vld [vmem:[%s4155_s15 + $0xf8] sm:$0xff] }
  0x1f   : > { %3719 = vmatpush3.bf16.msra.mxu1 %v3718_v33  ;;  %v3726_v59 = vpack.c.bf16 %v551_v47, %v550_v46  ;;  %v553_v61 = vmul.f32 %v4269_v50, %v4269_v50  ;;  %v570_v5 = vmul.f32 %v4278_v54, %v4278_v54  ;;  %v571_v6 = vmul.f32 %v4281_v55, %v4281_v55  ;;  %v4341_v39 = vld [vmem:[%s4155_s15 + $0x78] sm:$0xff] }
  0x20   : > { %3721 = vmatprep.subr.bf16.mxu1 %v3720_v36  ;;  %v3728_v3 = vpack.c.bf16 %v569_v52, %v568_v51  ;;  %v3698_v7 = vpack.c.bf16 %v4269_v50, %v4266_v49  ;;  %v3700_v11 = vpack.c.bf16 %v4281_v55, %v4278_v54  ;;  %v554_v13 = vmul.f32 %v4286_v57, %v4286_v57  ;;  %v4338_v36 = vld [vmem:[%s4155_s15 + $0x70] sm:$0xff] }
  0x21   : > { %3691 = vmatpush3.bf16.msra.mxu0 %v3690_v41  ;;  %v3730_v12 = vpack.c.bf16 %v553_v61, %v552_v60  ;;  %v555_v16 = vmul.f32 %v4289_v58, %v4289_v58  ;;  %v3732_v18 = vpack.c.bf16 %v571_v6, %v570_v5  ;;  %v572_v24 = vmul.f32 %v4296_v62, %v4296_v62  ;;  %v649_v5 = vld [vmem:[%s5404_s3 + $0x18] sm:$0xff] }
  0x22   : > { %3693 = vmatprep.subr.bf16.mxu0 %v3692_v44  ;;  %v573_v25 = vmul.f32 %v4299_v63, %v4299_v63  ;;  %v3702_v26 = vpack.c.bf16 %v4289_v58, %v4286_v57  ;;  %v3704_v31 = vpack.c.bf16 %v4299_v63, %v4296_v62  ;;  %v556_v33 = vmul.f32 %v4314_v19, %v4314_v19 }
  0x23   : > { %3723 = vmatpush3.bf16.msra.mxu1 %v3722_v45  ;;  %v3734_v32 = vpack.c.bf16 %v555_v16, %v554_v13  ;;  %v557_v34 = vmul.f32 %v4317_v20, %v4317_v20  ;;  %v574_v40 = vmul.f32 %v4326_v27, %v4326_v27  ;;  %v575_v41 = vmul.f32 %v4329_v30, %v4329_v30  ;;  %v653_v13 = vld [vmem:[%s5404_s3 + $0x38] sm:$0xff] }
  0x24   : > { %3725 = vmatprep.subr.bf16.mxu1 %v3724_v48  ;;  %v3736_v35 = vpack.c.bf16 %v573_v25, %v572_v24  ;;  %v3706_v44 = vpack.c.bf16 %v4317_v20, %v4314_v19  ;;  %v3708_v45 = vpack.c.bf16 %v4329_v30, %v4326_v27  ;;  %v558_v47 = vmul.f32 %v4338_v36, %v4338_v36 }
  0x25   : > { %3695 = vmatpush3.bf16.msra.mxu0 %v3694_v53  ;;  %v3738_v46 = vpack.c.bf16 %v557_v34, %v556_v33  ;;  %v559_v48 = vmul.f32 %v4341_v39, %v4341_v39  ;;  %v3740_v51 = vpack.c.bf16 %v575_v41, %v574_v40  ;;  %v3710_v52 = vpack.c.bf16 %v4341_v39, %v4338_v36  ;;  %v646_v53 = vld [vmem:[%s5404_s3] sm:$0xff] }
  0x26   : > { %3697 = vmatprep.subr.bf16.mxu0 %v3696_v56  ;;  %v647_v56 = vld [vmem:[%s5404_s3 + $0x8] sm:$0xff]  ;;  %v4047_v61 = vmov 0.0|0.0  }
  0x27   : > { %3727 = vmatpush3.bf16.msra.mxu1 %v3726_v59  ;;  %v3742_v59 = vpack.c.bf16 %v559_v48, %v558_v47  ;;  %v3745_v60 = vpack.c.bf16 %v647_v56, %v646_v53  ;;  %v3881_v53 = vld [vmem:[%s5409_s8] sm:$0xff]   ;;  %v3882_v56 = vld [vmem:[%s5407_s6 + $0x8] sm:$0xff]  }
  0x28   : > { %3729 = vmatprep.subr.bf16.mxu1 %v3728_v3  ;;  %v648_v3 = vld [vmem:[%s5404_s3 + $0x10] sm:$0xff] }
  0x29   : > { %3699 = vmatpush3.bf16.msra.mxu0 %v3698_v7  ;;  %v3748_v6 = vpack.c.bf16 %v649_v5, %v648_v3  ;;  %v650_v7 = vld [vmem:[%s5404_s3 + $0x20] sm:$0xff]  ;;  %v3886_v3 = vld [vmem:[%s5407_s6 + $0x18] sm:$0xff]  }
  0x2a   : > { %3701 = vmatprep.subr.bf16.mxu0 %v3700_v11  ;;  %v651_v11 = vld [vmem:[%s5404_s3 + $0x28] sm:$0xff]  ;;  %v3887_v5 = vld [vmem:[%s5409_s8 + $0x18] sm:$0xff]  }
  0x2b   : > { %3731 = vmatpush3.bf16.msra.mxu1 %v3730_v12  ;;  %v3751_v12 = vpack.c.bf16 %v651_v11, %v650_v7 }
  0x2c   : > { %3733 = vmatprep.subr.bf16.mxu1 %v3732_v18  ;;  %v4049_v18 = vmov 0.0  }
  0x2d   : > { %3703 = vmatpush3.bf16.msra.mxu0 %v3702_v26 }
  0x2e   : > { %3705 = vmatprep.subr.bf16.mxu0 %v3704_v31 }
  0x2f   : > { %3735 = vmatpush3.bf16.msra.mxu1 %v3734_v32 }
  0x30   : > { %3737 = vmatprep.subr.bf16.mxu1 %v3736_v35 }
  0x31   : > { %3707 = vmatpush3.bf16.msra.mxu0 %v3706_v44 }
  0x32   : > { %3709 = vmatprep.subr.bf16.mxu0 %v3708_v45 }
  0x33   : > { %3739 = vmatpush3.bf16.msra.mxu1 %v3738_v46 }
  0x34   : > { %3741 = vmatprep.subr.bf16.mxu1 %v3740_v51 }
  0x35   : > { %3711 = vmatpush3.bf16.msra.mxu0 %v3710_v52  ;;  %v3880_v52 = vld [vmem:[%s5407_s6] sm:$0xff]  }
  0x36   : > { %3744 = vmatprep.subr.bf16.mxu0 %v4047_v61 }
  0x37   : > { %3743 = vmatpush3.bf16.msra.mxu1 %v3742_v59  ;;  %v3883_v59 = vld [vmem:[%s5409_s8 + $0x8] sm:$0xff]  }
  0x38   : > { %539 = vmatmul.mubr.f32.vlgmr.msra.gmra.mrb[0].mxu0 %v4046_v10  ;;  %3756 = vmatprep.subr.bf16.mxu1 %v4047_v61 }
  0x39   : > { %3746 = vmatpush3.bf16.msra.mxu0 %v3745_v60  ;;  %3428 = vmatprep.mubr.msk.f32.mxu0 %vm4048_vm0, %v4049_v18 }
  0x3a   : > { %641 = vmatmul.mubr.f32.vlgmr.msra.gmra.mrb[0].mxu1 %v4046_v10  ;;  %3747 = vmatprep.subr.bf16.mxu0 %v4047_v61  ;;  %v652_v10 = vld [vmem:[%s5404_s3 + $0x30] sm:$0xff] }
  0x3b   : > { %3758 = vmatpush3.bf16.msra.mxu1 %v3745_v60  ;;  %v3754_v16 = vpack.c.bf16 %v653_v13, %v652_v10  ;;  %3447 = vmatprep.mubr.msk.f32.mxu1 %vm4048_vm0, %v4049_v18  ;;  %v987_v13 = vlaneseq }
  0x3c   : > { %3759 = vmatprep.subr.bf16.mxu1 %v4047_v61 }
  0x3d   : > { %3749 = vmatpush3.bf16.msra.mxu0 %v3748_v6 }
  0x3e   : > { %3750 = vmatprep.subr.bf16.mxu0 %v4047_v61 }
  0x3f   : > { %3761 = vmatpush3.bf16.msra.mxu1 %v3748_v6 }
  0x40   : > { %3762 = vmatprep.subr.bf16.mxu1 %v4047_v61 }
  0x41   : > { %3752 = vmatpush3.bf16.msra.mxu0 %v3751_v12 }
  0x42   : > { %3753 = vmatprep.subr.bf16.mxu0 %v4047_v61 }
  0x43   : > { %3764 = vmatpush3.bf16.msra.mxu1 %v3751_v12 }
  0x44   : > { %3765 = vmatprep.subr.bf16.mxu1 %v4047_v61 }
  0x45   : > { %3755 = vmatpush3.bf16.msra.mxu0 %v3754_v16 }
  0x46   : > { %3768 = vmatprep.subr.bf16.mxu0 %v4047_v61 }
  0x47   : > { %3767 = vmatpush3.bf16.msra.mxu1 %v3754_v16 }
  0x48   : > { %3784 = vmatprep.subr.bf16.mxu1 %v4047_v61 }
 0x10b   : > { %v3242_v24 = vpop.f32.mrb[0].mxu0 }
 0x10c   : > { %v3243_v25 = vpop.f32.mrb[1].mxu0 }
 0x10d   : > { %v3244_v26 = vadd.f32 %v3243_v25, %v3242_v24  ;;  %v3277_v31 = vpop.f32.mrb[0].mxu1 }
 0x10e   : > { %v3278_v33 = vpop.f32.mrb[1].mxu1 }
 0x10f   : > { %v3279_v34 = vadd.f32 %v3278_v33, %v3277_v31  ;;  %3429 = vmatmul.mubr.msk.f32.vlgmr.msra.gmra.mrb[2].mxu0 %vm654_vm2, %v3244_v26  ;;  %v980_v31 = vld [vmem:[%s5403_s2] sm:$0x1] }
 0x110   : > { %3771 = vmatpush3.bf16.xpose.msk.msra.mxu0 %vm4387_vm3, %v3745_v60  ;;  %3466 = vmatprep.mubr.msk.f32.mxu0 %vm4048_vm0, %v4049_v18 }
 0x111   : > { %3448 = vmatmul.mubr.msk.f32.vlgmr.msra.gmra.mrb[2].mxu1 %vm654_vm2, %v3279_v34  ;;  %3772 = vmatprep.subr.bf16.mxu0 %v4047_v61 }
 0x112   : > { %3787 = vmatpush3.bf16.xpose.msk.msra.mxu1 %vm4387_vm3, %v3745_v60  ;;  %3485 = vmatprep.mubr.msk.f32.mxu1 %vm4048_vm0, %v4049_v18  ;;  %v3884_v60 = vld [vmem:[%s5407_s6 + $0x10] sm:$0xff]   ;;  %v904_v18 = vld [vmem:[%s5402_s1] sm:$0x1] }
 0x113   : > { %3788 = vmatprep.subr.bf16.mxu1 %v4047_v61 }
 0x118   : > { %3775 = vmatpush3.bf16.xpose.msk.msra.mxu0 %vm4387_vm3, %v3748_v6 }
 0x119   : > { %3776 = vmatprep.subr.bf16.mxu0 %v4047_v61 }
 0x11a   : > { %3791 = vmatpush3.bf16.xpose.msk.msra.mxu1 %vm4387_vm3, %v3748_v6 }
 0x11b   : > { %3792 = vmatprep.subr.bf16.mxu1 %v4047_v61 }
 0x120   : > { %3779 = vmatpush3.bf16.xpose.msk.msra.mxu0 %vm4387_vm3, %v3751_v12 }
 0x121   : > { %3780 = vmatprep.subr.bf16.mxu0 %v4047_v61 }
 0x122   : > { %3795 = vmatpush3.bf16.xpose.msk.msra.mxu1 %vm4387_vm3, %v3751_v12 }
 0x123   : > { %3796 = vmatprep.subr.bf16.mxu1 %v4047_v61  ;;  %v3885_v61 = vld [vmem:[%s5409_s8 + $0x10] sm:$0xff]  }
 0x128   : > { %3783 = vmatpush3.bf16.xpose.msk.msra.mxu0 %vm4387_vm3, %v3754_v16 }
 0x129   : > { %3488 = vmatprep.subr.bf16.mxu0 %v3880_v52 }
 0x12a   : > { %3799 = vmatpush3.bf16.xpose.msk.msra.mxu1 %vm4387_vm3, %v3754_v16  ;;  %v988_v16 = vshrl.u32 %v987_v13, 7 }
 0x12b   : > { %3528 = vmatprep.subr.bf16.mxu1 %v3881_v53 }
 0x12c   : > { %v989_v24 = vsub.s32 0, %v988_v16 }
 0x1e2   : > { %v724_v35 = vpop.f32.mrb[2].mxu0 }
 0x1e3   : > { %v728_v40 = vmul.f32 0.001953125, %v724_v35  ;;  %v3430_v41 = vpop.f32.mrb[3].mxu0 }
 0x1e4   : > { %v798_v44 = vpop.f32.mrb[2].mxu1 }
 0x1e5   : > { %v803_v45 = vmul.f32 %v728_v40, %v728_v40  ;;  %v802_v46 = vmul.f32 0.001953125, %v798_v44  ;;  %v3449_v47 = vpop.f32.mrb[3].mxu1  ;;  %3467 = vmatmul.mubr.msk.f32.vlgmr.msra.gmra.mrb[4].mxu0 %vm806_vm1, %v728_v40 }
 0x1e6   : > { %3489 = vmatpush3.bf16.msra.mxu0 %v3880_v52 }
 0x1e7   : > { %v804_v48 = vsub.f32 %v802_v46, %v803_v45  ;;  %3490 = vmatprep.subr.bf16.mxu0 %v3882_v56 }
 0x1e9   : > { %v805_v51 = vmax.f32 %v804_v48, 0.0 }
 0x1ea   : > { %3491 = vmatpush3.bf16.msra.mxu0 %v3882_v56 }
 0x1eb   : > { %3486 = vmatmul.mubr.msk.f32.vlgmr.msra.gmra.mrb[4].mxu1 %vm806_vm1, %v805_v51  ;;  %3492 = vmatprep.subr.bf16.mxu0 %v3884_v60 }
 0x1ec   : > { %3529 = vmatpush3.bf16.msra.mxu1 %v3881_v53 }
 0x1ed   : > { %3530 = vmatprep.subr.bf16.mxu1 %v3883_v59 }
 0x1ee   : > { %3493 = vmatpush3.bf16.msra.mxu0 %v3884_v60 }
 0x1ef   : > { %3494 = vmatprep.subr.bf16.mxu0 %v3886_v3 }
 0x1f0   : > { %3531 = vmatpush3.bf16.msra.mxu1 %v3883_v59 }
 0x1f1   : > { %3532 = vmatprep.subr.bf16.mxu1 %v3885_v61 }
 0x1f2   : > { %3495 = vmatpush3.bf16.msra.mxu0 %v3886_v3 }
 0x1f4   : > { %3533 = vmatpush3.bf16.msra.mxu1 %v3885_v61 }
 0x1f5   : > { %3534 = vmatprep.subr.bf16.mxu1 %v3887_v5 }
 0x1f8   : > { %3535 = vmatpush3.bf16.msra.mxu1 %v3887_v5 }
 0x2b8   : > { %v900_v6 = vpop.f32.mrb[4].mxu0 }
 0x2b9   : > { %v3468_v7 = vpop.f32.mrb[5].mxu0 }
 0x2be   : > { %v974_v11 = vpop.f32.mrb[4].mxu1 }
 0x2bf   : > { %v975_v12 = vadd.f32 1e-06, %v974_v11  ;;  %v3487_v10 = vpop.f32.mrb[5].mxu1 }
 0x2c1   : > { %3888 = vrsqrt.f32 %v975_v12 }
 0x2cb   : > { %v3889_v25 = vpop.eup %3888 }
 0x2cc   : > { %v979_v26 = vmul.f32 %v3889_v25, %v904_v18 }
 0x2ce   : > { %v981_v32 = vmul.f32 %v979_v26, %v900_v6  ;;  %984 = vst.msk [vmem:[#allocation4] sm:$0x1] %vm983_vm4, %v979_v26  ;;  %v990_v33 = vrot.slane %v979_v26, %v989_v24 }
 0x2d0   : > { %v982_v34 = vsub.f32 %v980_v31, %v981_v32  ;;  %v992_v35 = vmul.f32 %v990_v33, %v4170_v2  ;;  %v993_v40 = vmul.f32 %v990_v33, %v4175_v4  ;;  %v994_v41 = vmul.f32 %v990_v33, %v4197_v14 }
 0x2d1   : > { %v995_v44 = vmul.f32 %v990_v33, %v4200_v15  ;;  %v996_v45 = vmul.f32 %v990_v33, %v4216_v22  ;;  %v997_v46 = vmul.f32 %v990_v33, %v4219_v23  ;;  %v998_v47 = vmul.f32 %v990_v33, %v4242_v37 }
 0x2d2   : > { %985 = vst.msk [vmem:[#allocation5] sm:$0x1] %vm983_vm4, %v982_v34  ;;  %v4450_v48 = vrot.slane %v982_v34, %v989_v24  ;;  %v999_v51 = vmul.f32 %v990_v33, %v4245_v38  ;;  %v1000_v52 = vmul.f32 %v990_v33, %v4266_v49  ;;  %v1001_v2 = vmul.f32 %v990_v33, %v4269_v50 }
 0x2d3   : > { %v1002_v4 = vmul.f32 %v990_v33, %v4286_v57  ;;  %v1003_v14 = vmul.f32 %v990_v33, %v4289_v58  ;;  %v1004_v15 = vmul.f32 %v990_v33, %v4314_v19  ;;  %v1005_v22 = vmul.f32 %v990_v33, %v4317_v20 }
 0x2d4   : > { %v1006_v23 = vmul.f32 %v990_v33, %v4338_v36  ;;  %v1007_v37 = vmul.f32 %v990_v33, %v4341_v39  ;;  %v1008_v53 = vmul.f32 %v990_v33, %v4164_v0  ;;  %v1009_v38 = vmul.f32 %v990_v33, %v4167_v1 }
 0x2d5   : > { %v1010_v49 = vmul.f32 %v990_v33, %v4184_v8  ;;  %v1011_v50 = vmul.f32 %v990_v33, %v4187_v9  ;;  %v1012_v57 = vmul.f32 %v990_v33, %v4205_v17  ;;  %v1013_v58 = vmul.f32 %v990_v33, %v4213_v21 }
 0x2d6   : > { %v1014_v19 = vmul.f32 %v990_v33, %v4228_v28  ;;  %v1015_v20 = vmul.f32 %v990_v33, %v4231_v29  ;;  %v1016_v36 = vmul.f32 %v990_v33, %v4254_v42  ;;  %v1017_v39 = vmul.f32 %v990_v33, %v4257_v43 }
 0x2d7   : > { %v1018_v0 = vmul.f32 %v990_v33, %v4278_v54  ;;  %v1019_v1 = vmul.f32 %v990_v33, %v4281_v55  ;;  %v1020_v8 = vmul.f32 %v990_v33, %v4296_v62  ;;  %v1021_v9 = vmul.f32 %v990_v33, %v4299_v63 }
 0x2d8   : > { %v1022_v17 = vmul.f32 %v990_v33, %v4326_v27  ;;  %v1023_v21 = vmul.f32 %v990_v33, %v4329_v30  ;;  %v1030_v28 = vadd.f32 %v4450_v48, %v992_v35  ;;  %v1031_v29 = vadd.f32 %v4450_v48, %v993_v40 }
 0x2d9   : > { %v1032_v42 = vadd.f32 %v4450_v48, %v994_v41  ;;  %v1033_v43 = vadd.f32 %v4450_v48, %v995_v44  ;;  %v1046_v54 = vadd.f32 %v4450_v48, %v1008_v53  ;;  %v1047_v55 = vadd.f32 %v4450_v48, %v1009_v38  ;;  %v4544_v38 = vld [vmem:[%s5408_s7] ss:$0 sm:$0xff] }
 0x2da   : > { %v1062_v56 = vpack.c.bf16 %v1031_v29, %v1030_v28  ;;  %v1034_v62 = vadd.f32 %v4450_v48, %v996_v45  ;;  %v1035_v63 = vadd.f32 %v4450_v48, %v997_v46  ;;  %v1036_v27 = vadd.f32 %v4450_v48, %v998_v47 }
 0x2db   : > { %v1063_v30 = vpack.c.bf16 %v1033_v43, %v1032_v42  ;;  %v1037_v59 = vadd.f32 %v4450_v48, %v999_v51  ;;  %v1038_v60 = vadd.f32 %v4450_v48, %v1000_v52  ;;  %v1039_v61 = vadd.f32 %v4450_v48, %v1001_v2 }
 0x2dc   : > { %3496 = vmatprep.mubr.msk.bf16.mxu0 %vm654_vm2, %v1062_v56  ;;  %3536 = vmatprep.mubr.msk.bf16.mxu1 %vm654_vm2, %v1062_v56  ;;  %v1064_v3 = vpack.c.bf16 %v1035_v63, %v1034_v62  ;;  %v1040_v5 = vadd.f32 %v4450_v48, %v1002_v4  ;;  %v1041_v6 = vadd.f32 %v4450_v48, %v1003_v14 }
 0x2dd   : > { %3497 = vmatmul.mubr.msk.bf16.vlgmr.msra.gmra.mrb[8].mxu0 %vm654_vm2, %v1063_v30  ;;  %3537 = vmatmul.mubr.msk.bf16.vlgmr.msra.gmra.mrb[8].mxu1 %vm654_vm2, %v1063_v30  ;;  %v1065_v7 = vpack.c.bf16 %v1037_v59, %v1036_v27  ;;  %v1066_v11 = vpack.c.bf16 %v1039_v61, %v1038_v60  ;;  %v1042_v12 = vadd.f32 %v4450_v48, %v1004_v15 }
 0x2de   : > { %3500 = vmatprep.mubr.msk.bf16.mxu0 %vm654_vm2, %v1064_v3  ;;  %3540 = vmatprep.mubr.msk.bf16.mxu1 %vm654_vm2, %v1064_v3  ;;  %v1067_v10 = vpack.c.bf16 %v1041_v6, %v1040_v5  ;;  %v1043_v13 = vadd.f32 %v4450_v48, %v1005_v22  ;;  %v1044_v16 = vadd.f32 %v4450_v48, %v1006_v23 }
 0x2df   : > { %v1045_v18 = vadd.f32 %v4450_v48, %v1007_v37  ;;  %v1070_v24 = vpack.c.bf16 %v1047_v55, %v1046_v54  ;;  %v1048_v25 = vadd.f32 %v4450_v48, %v1010_v49  ;;  %v1049_v26 = vadd.f32 %v4450_v48, %v1011_v50  ;;  %v4549_v50 = vld [vmem:[%s5410_s9] ss:$0 sm:$0xff] }
 0x2e0   : > { %v1068_v31 = vpack.c.bf16 %v1043_v13, %v1042_v12  ;;  %v1050_v32 = vadd.f32 %v4450_v48, %v1012_v57  ;;  %v1051_v33 = vadd.f32 %v4450_v48, %v1013_v58  ;;  %v1052_v34 = vadd.f32 %v4450_v48, %v1014_v19 }
 0x2e1   : > { %v1069_v35 = vpack.c.bf16 %v1045_v18, %v1044_v16  ;;  %v1071_v40 = vpack.c.bf16 %v1049_v26, %v1048_v25  ;;  %v1053_v41 = vadd.f32 %v4450_v48, %v1015_v20  ;;  %v1054_v44 = vadd.f32 %v4450_v48, %v1016_v36 }
 0x2e2   : > { %v1072_v45 = vpack.c.bf16 %v1051_v33, %v1050_v32  ;;  %v1055_v46 = vadd.f32 %v4450_v48, %v1017_v39  ;;  %v1056_v47 = vadd.f32 %v4450_v48, %v1018_v0  ;;  %v1057_v51 = vadd.f32 %v4450_v48, %v1019_v1 }
 0x2e3   : > { %v1073_v52 = vpack.c.bf16 %v1053_v41, %v1052_v34  ;;  %v1058_v2 = vadd.f32 %v4450_v48, %v1020_v8  ;;  %v1059_v4 = vadd.f32 %v4450_v48, %v1021_v9  ;;  %v1060_v14 = vadd.f32 %v4450_v48, %v1022_v17 }
 0x2e4   : > { %v1074_v15 = vpack.c.bf16 %v1055_v46, %v1054_v44  ;;  %v1075_v22 = vpack.c.bf16 %v1057_v51, %v1056_v47  ;;  %v1061_v23 = vadd.f32 %v4450_v48, %v1023_v21 }
 0x2e5   : > { %3501 = vmatmul.mubr.msk.bf16.gmra.mrb[12].mxu0 %vm654_vm2, %v1065_v7  ;;  %3541 = vmatmul.mubr.msk.bf16.gmra.mrb[12].mxu1 %vm654_vm2, %v1065_v7  ;;  %v1076_v37 = vpack.c.bf16 %v1059_v4, %v1058_v2 }
 0x2e6   : > { %3504 = vmatprep.mubr.msk.bf16.mxu0 %vm654_vm2, %v1066_v11  ;;  %3544 = vmatprep.mubr.msk.bf16.mxu1 %vm654_vm2, %v1066_v11  ;;  %v1077_v53 = vpack.c.bf16 %v1061_v23, %v1060_v14 }
 0x2ed   : > { %3505 = vmatmul.mubr.msk.bf16.gmra.mrb[16].mxu0 %vm654_vm2, %v1067_v10  ;;  %3545 = vmatmul.mubr.msk.bf16.gmra.mrb[16].mxu1 %vm654_vm2, %v1067_v10 }
 0x2ee   : > { %3508 = vmatprep.mubr.msk.bf16.mxu0 %vm654_vm2, %v1068_v31  ;;  %3548 = vmatprep.mubr.msk.bf16.mxu1 %vm654_vm2, %v1068_v31 }
 0x2f5   : > { %3509 = vmatmul.mubr.msk.bf16.gmra.mrb[20].mxu0 %vm654_vm2, %v1069_v35  ;;  %3549 = vmatmul.mubr.msk.bf16.gmra.mrb[20].mxu1 %vm654_vm2, %v1069_v35 }
 0x2f6   : > { %3512 = vmatprep.mubr.msk.bf16.mxu0 %vm654_vm2, %v1070_v24  ;;  %3552 = vmatprep.mubr.msk.bf16.mxu1 %vm654_vm2, %v1070_v24 }
 0x2fd   : > { %3513 = vmatmul.mubr.msk.bf16.gmra.mrb[24].mxu0 %vm654_vm2, %v1071_v40  ;;  %3553 = vmatmul.mubr.msk.bf16.gmra.mrb[24].mxu1 %vm654_vm2, %v1071_v40 }
 0x2fe   : > { %3516 = vmatprep.mubr.msk.bf16.mxu0 %vm654_vm2, %v1072_v45  ;;  %3556 = vmatprep.mubr.msk.bf16.mxu1 %vm654_vm2, %v1072_v45 }
 0x305   : > { %3517 = vmatmul.mubr.msk.bf16.gmra.mrb[28].mxu0 %vm654_vm2, %v1073_v52  ;;  %3557 = vmatmul.mubr.msk.bf16.gmra.mrb[28].mxu1 %vm654_vm2, %v1073_v52 }
 0x306   : > { %3520 = vmatprep.mubr.msk.bf16.mxu0 %vm654_vm2, %v1074_v15  ;;  %3560 = vmatprep.mubr.msk.bf16.mxu1 %vm654_vm2, %v1074_v15 }
 0x30d   : > { %3521 = vmatmul.mubr.msk.bf16.gmra.mrb[32].mxu0 %vm654_vm2, %v1075_v22  ;;  %3561 = vmatmul.mubr.msk.bf16.gmra.mrb[32].mxu1 %vm654_vm2, %v1075_v22 }
 0x30e   : > { %3524 = vmatprep.mubr.msk.bf16.mxu0 %vm654_vm2, %v1076_v37  ;;  %3564 = vmatprep.mubr.msk.bf16.mxu1 %vm654_vm2, %v1076_v37 }
 0x315   : > { %3525 = vmatmul.mubr.msk.bf16.gmra.mrb[36].mxu0 %vm654_vm2, %v1077_v53  ;;  %3565 = vmatmul.mubr.msk.bf16.gmra.mrb[36].mxu1 %vm654_vm2, %v1077_v53 }
 0x3b0   : > { %v3498_v48 = vpop.f32.mrb[8].mxu0  ;;  %v3538_v49 = vpop.f32.mrb[8].mxu1 }
 0x3b1   : > { %v1199_v57 = vpop.f32.mrb[9].mxu0  ;;  %v1431_v58 = vpop.f32.mrb[9].mxu1  ;;  %v1208_v36 = vadd.f32 %v3498_v48, %v4544_v38  ;;  %v1440_v39 = vadd.f32 %v3538_v49, %v4549_v50 }
 0x3b2   : > { %v3499_v19 = vpop.f32.mrb[10].mxu0  ;;  %v3539_v20 = vpop.f32.mrb[10].mxu1  ;;  %v1200_v17 = vadd.f32 %v4544_v38, %v1199_v57  ;;  %v1432_v21 = vadd.f32 %v4549_v50, %v1431_v58 }
 0x3b3   : > { %v1211_v0 = vadd.f32 %v3499_v19, %v4544_v38  ;;  %v1443_v1 = vadd.f32 %v3539_v20, %v4549_v50  ;;  %v1202_v8 = vpop.f32.mrb[11].mxu0  ;;  %v1434_v9 = vpop.f32.mrb[11].mxu1 }
 0x3b4   : > { %v1203_v28 = vadd.f32 %v4544_v38, %v1202_v8  ;;  %v1435_v29 = vadd.f32 %v4549_v50, %v1434_v9 }
 0x3b5   : > { %v1327_v42 = vpack.c.bf16 %v1211_v0, %v1208_v36  ;;  %v1559_v43 = vpack.c.bf16 %v1443_v1, %v1440_v39 }
 0x3b6   : > { %v1326_v54 = vpack.c.bf16 %v1203_v28, %v1200_v17  ;;  %v1558_v55 = vpack.c.bf16 %v1435_v29, %v1432_v21 }
 0x3b7   : > { %1343 = vst.msk [vmem:[#allocation2 + $0x8] sm:$0xff] %vm654_vm2, %v1327_v42  ;;  %1575 = vst.msk [vmem:[#allocation3 + $0x8] sm:$0xff] %vm654_vm2, %v1559_v43 }
 0x3b8   : > { %1342 = vst.msk [vmem:[#allocation2] sm:$0xff] %vm654_vm2, %v1326_v54  ;;  %1574 = vst.msk [vmem:[#allocation3] sm:$0xff] %vm654_vm2, %v1558_v55  ;;  %v3502_v56 = vpop.f32.mrb[12].mxu0  ;;  %v3542_v62 = vpop.f32.mrb[12].mxu1 }
 0x3b9   : > { %v1215_v63 = vpop.f32.mrb[13].mxu0  ;;  %v1447_v27 = vpop.f32.mrb[13].mxu1  ;;  %v1224_v60 = vadd.f32 %v3502_v56, %v4544_v38  ;;  %v1456_v61 = vadd.f32 %v3542_v62, %v4549_v50 }
 0x3ba   : > { %v3503_v30 = vpop.f32.mrb[14].mxu0  ;;  %v3543_v59 = vpop.f32.mrb[14].mxu1  ;;  %v1216_v11 = vadd.f32 %v4544_v38, %v1215_v63  ;;  %v1448_v12 = vadd.f32 %v4549_v50, %v1447_v27 }
 0x3bb   : > { %v1227_v3 = vadd.f32 %v3503_v30, %v4544_v38  ;;  %v1459_v5 = vadd.f32 %v3543_v59, %v4549_v50  ;;  %v1218_v6 = vpop.f32.mrb[15].mxu0  ;;  %v1450_v7 = vpop.f32.mrb[15].mxu1 }
 0x3bc   : > { %v1219_v10 = vadd.f32 %v4544_v38, %v1218_v6  ;;  %v1451_v13 = vadd.f32 %v4549_v50, %v1450_v7 }
 0x3bd   : > { %v1329_v16 = vpack.c.bf16 %v1227_v3, %v1224_v60  ;;  %v1561_v18 = vpack.c.bf16 %v1459_v5, %v1456_v61 }
 0x3be   : > { %v1328_v24 = vpack.c.bf16 %v1219_v10, %v1216_v11  ;;  %v1560_v25 = vpack.c.bf16 %v1451_v13, %v1448_v12 }
 0x3bf   : > { %1345 = vst.msk [vmem:[#allocation2 + $0x18] sm:$0xff] %vm654_vm2, %v1329_v16  ;;  %1577 = vst.msk [vmem:[#allocation3 + $0x18] sm:$0xff] %vm654_vm2, %v1561_v18 }
 0x3c0   : > { %1344 = vst.msk [vmem:[#allocation2 + $0x10] sm:$0xff] %vm654_vm2, %v1328_v24  ;;  %1576 = vst.msk [vmem:[#allocation3 + $0x10] sm:$0xff] %vm654_vm2, %v1560_v25  ;;  %v3506_v26 = vpop.f32.mrb[16].mxu0  ;;  %v3546_v31 = vpop.f32.mrb[16].mxu1 }
 0x3c1   : > { %v1231_v32 = vpop.f32.mrb[17].mxu0  ;;  %v1463_v33 = vpop.f32.mrb[17].mxu1  ;;  %v1240_v40 = vadd.f32 %v3506_v26, %v4544_v38  ;;  %v1472_v41 = vadd.f32 %v3546_v31, %v4549_v50 }
 0x3c2   : > { %v3507_v34 = vpop.f32.mrb[18].mxu0  ;;  %v3547_v35 = vpop.f32.mrb[18].mxu1  ;;  %v1232_v51 = vadd.f32 %v4544_v38, %v1231_v32  ;;  %v1464_v52 = vadd.f32 %v4549_v50, %v1463_v33 }
 0x3c3   : > { %v1243_v44 = vadd.f32 %v3507_v34, %v4544_v38  ;;  %v1475_v45 = vadd.f32 %v3547_v35, %v4549_v50  ;;  %v1234_v46 = vpop.f32.mrb[19].mxu0  ;;  %v1466_v47 = vpop.f32.mrb[19].mxu1 }
 0x3c4   : > { %v1235_v2 = vadd.f32 %v4544_v38, %v1234_v46  ;;  %v1467_v4 = vadd.f32 %v4549_v50, %v1466_v47 }
 0x3c5   : > { %v1331_v14 = vpack.c.bf16 %v1243_v44, %v1240_v40  ;;  %v1563_v15 = vpack.c.bf16 %v1475_v45, %v1472_v41 }
 0x3c6   : > { %v1330_v22 = vpack.c.bf16 %v1235_v2, %v1232_v51  ;;  %v1562_v23 = vpack.c.bf16 %v1467_v4, %v1464_v52 }
 0x3c7   : > { %1347 = vst.msk [vmem:[#allocation2 + $0x28] sm:$0xff] %vm654_vm2, %v1331_v14  ;;  %1579 = vst.msk [vmem:[#allocation3 + $0x28] sm:$0xff] %vm654_vm2, %v1563_v15 }
 0x3c8   : > { %1346 = vst.msk [vmem:[#allocation2 + $0x20] sm:$0xff] %vm654_vm2, %v1330_v22  ;;  %1578 = vst.msk [vmem:[#allocation3 + $0x20] sm:$0xff] %vm654_vm2, %v1562_v23  ;;  %v3510_v37 = vpop.f32.mrb[20].mxu0  ;;  %v3550_v53 = vpop.f32.mrb[20].mxu1 }
 0x3c9   : > { %v1247_v48 = vpop.f32.mrb[21].mxu0  ;;  %v1479_v49 = vpop.f32.mrb[21].mxu1  ;;  %v1256_v19 = vadd.f32 %v3510_v37, %v4544_v38  ;;  %v1488_v20 = vadd.f32 %v3550_v53, %v4549_v50 }
 0x3ca   : > { %v3511_v57 = vpop.f32.mrb[22].mxu0  ;;  %v3551_v58 = vpop.f32.mrb[22].mxu1  ;;  %v1248_v8 = vadd.f32 %v4544_v38, %v1247_v48  ;;  %v1480_v9 = vadd.f32 %v4549_v50, %v1479_v49 }
 0x3cb   : > { %v1259_v36 = vadd.f32 %v3511_v57, %v4544_v38  ;;  %v1491_v39 = vadd.f32 %v3551_v58, %v4549_v50  ;;  %v1250_v0 = vpop.f32.mrb[23].mxu0  ;;  %v1482_v1 = vpop.f32.mrb[23].mxu1 }
 0x3cc   : > { %v1251_v17 = vadd.f32 %v4544_v38, %v1250_v0  ;;  %v1483_v21 = vadd.f32 %v4549_v50, %v1482_v1 }
 0x3cd   : > { %v1333_v28 = vpack.c.bf16 %v1259_v36, %v1256_v19  ;;  %v1565_v29 = vpack.c.bf16 %v1491_v39, %v1488_v20 }
 0x3ce   : > { %v1332_v42 = vpack.c.bf16 %v1251_v17, %v1248_v8  ;;  %v1564_v43 = vpack.c.bf16 %v1483_v21, %v1480_v9 }
 0x3cf   : > { %1349 = vst.msk [vmem:[#allocation2 + $0x38] sm:$0xff] %vm654_vm2, %v1333_v28  ;;  %1581 = vst.msk [vmem:[#allocation3 + $0x38] sm:$0xff] %vm654_vm2, %v1565_v29 }
 0x3d0   : > { %1348 = vst.msk [vmem:[#allocation2 + $0x30] sm:$0xff] %vm654_vm2, %v1332_v42  ;;  %1580 = vst.msk [vmem:[#allocation3 + $0x30] sm:$0xff] %vm654_vm2, %v1564_v43  ;;  %v3514_v54 = vpop.f32.mrb[24].mxu0  ;;  %v3554_v55 = vpop.f32.mrb[24].mxu1 }
 0x3d1   : > { %v1263_v56 = vpop.f32.mrb[25].mxu0  ;;  %v1495_v62 = vpop.f32.mrb[25].mxu1  ;;  %v1272_v30 = vadd.f32 %v3514_v54, %v4544_v38  ;;  %v1504_v59 = vadd.f32 %v3554_v55, %v4549_v50 }
 0x3d2   : > { %v3515_v63 = vpop.f32.mrb[26].mxu0  ;;  %v3555_v27 = vpop.f32.mrb[26].mxu1  ;;  %v1264_v6 = vadd.f32 %v4544_v38, %v1263_v56  ;;  %v1496_v7 = vadd.f32 %v4549_v50, %v1495_v62 }
 0x3d3   : > { %v1275_v60 = vadd.f32 %v3515_v63, %v4544_v38  ;;  %v1507_v61 = vadd.f32 %v3555_v27, %v4549_v50  ;;  %v1266_v3 = vpop.f32.mrb[27].mxu0  ;;  %v1498_v5 = vpop.f32.mrb[27].mxu1 }
 0x3d4   : > { %v1267_v11 = vadd.f32 %v4544_v38, %v1266_v3  ;;  %v1499_v12 = vadd.f32 %v4549_v50, %v1498_v5 }
 0x3d5   : > { %v1335_v10 = vpack.c.bf16 %v1275_v60, %v1272_v30  ;;  %v1567_v13 = vpack.c.bf16 %v1507_v61, %v1504_v59 }
 0x3d6   : > { %v1334_v16 = vpack.c.bf16 %v1267_v11, %v1264_v6  ;;  %v1566_v18 = vpack.c.bf16 %v1499_v12, %v1496_v7 }
 0x3d7   : > { %1351 = vst.msk [vmem:[#allocation2 + $0x48] sm:$0xff] %vm654_vm2, %v1335_v10  ;;  %1583 = vst.msk [vmem:[#allocation3 + $0x48] sm:$0xff] %vm654_vm2, %v1567_v13 }
 0x3d8   : > { %1350 = vst.msk [vmem:[#allocation2 + $0x40] sm:$0xff] %vm654_vm2, %v1334_v16  ;;  %1582 = vst.msk [vmem:[#allocation3 + $0x40] sm:$0xff] %vm654_vm2, %v1566_v18  ;;  %v3518_v24 = vpop.f32.mrb[28].mxu0  ;;  %v3558_v25 = vpop.f32.mrb[28].mxu1 }
 0x3d9   : > { %v1279_v26 = vpop.f32.mrb[29].mxu0  ;;  %v1511_v31 = vpop.f32.mrb[29].mxu1  ;;  %v1288_v34 = vadd.f32 %v3518_v24, %v4544_v38  ;;  %v1520_v35 = vadd.f32 %v3558_v25, %v4549_v50 }
 0x3da   : > { %v3519_v32 = vpop.f32.mrb[30].mxu0  ;;  %v3559_v33 = vpop.f32.mrb[30].mxu1  ;;  %v1280_v46 = vadd.f32 %v4544_v38, %v1279_v26  ;;  %v1512_v47 = vadd.f32 %v4549_v50, %v1511_v31 }
 0x3db   : > { %v1291_v40 = vadd.f32 %v3519_v32, %v4544_v38  ;;  %v1523_v41 = vadd.f32 %v3559_v33, %v4549_v50  ;;  %v1282_v44 = vpop.f32.mrb[31].mxu0  ;;  %v1514_v45 = vpop.f32.mrb[31].mxu1 }
 0x3dc   : > { %v1283_v51 = vadd.f32 %v4544_v38, %v1282_v44  ;;  %v1515_v52 = vadd.f32 %v4549_v50, %v1514_v45 }
 0x3dd   : > { %v1337_v2 = vpack.c.bf16 %v1291_v40, %v1288_v34  ;;  %v1569_v4 = vpack.c.bf16 %v1523_v41, %v1520_v35 }
 0x3de   : > { %v1336_v14 = vpack.c.bf16 %v1283_v51, %v1280_v46  ;;  %v1568_v15 = vpack.c.bf16 %v1515_v52, %v1512_v47 }
 0x3df   : > { %1353 = vst.msk [vmem:[#allocation2 + $0x58] sm:$0xff] %vm654_vm2, %v1337_v2  ;;  %1585 = vst.msk [vmem:[#allocation3 + $0x58] sm:$0xff] %vm654_vm2, %v1569_v4 }
 0x3e0   : > { %1352 = vst.msk [vmem:[#allocation2 + $0x50] sm:$0xff] %vm654_vm2, %v1336_v14  ;;  %1584 = vst.msk [vmem:[#allocation3 + $0x50] sm:$0xff] %vm654_vm2, %v1568_v15  ;;  %v3522_v22 = vpop.f32.mrb[32].mxu0  ;;  %v3562_v23 = vpop.f32.mrb[32].mxu1 }
 0x3e1   : > { %v1295_v37 = vpop.f32.mrb[33].mxu0  ;;  %v1527_v53 = vpop.f32.mrb[33].mxu1  ;;  %v1304_v57 = vadd.f32 %v3522_v22, %v4544_v38  ;;  %v1536_v58 = vadd.f32 %v3562_v23, %v4549_v50 }
 0x3e2   : > { %v3523_v48 = vpop.f32.mrb[34].mxu0  ;;  %v3563_v49 = vpop.f32.mrb[34].mxu1  ;;  %v1296_v0 = vadd.f32 %v4544_v38, %v1295_v37  ;;  %v1528_v1 = vadd.f32 %v4549_v50, %v1527_v53 }
 0x3e3   : > { %v1307_v19 = vadd.f32 %v3523_v48, %v4544_v38  ;;  %v1539_v20 = vadd.f32 %v3563_v49, %v4549_v50  ;;  %v1298_v36 = vpop.f32.mrb[35].mxu0  ;;  %v1530_v39 = vpop.f32.mrb[35].mxu1 }
 0x3e4   : > { %v1299_v8 = vadd.f32 %v4544_v38, %v1298_v36  ;;  %v1531_v9 = vadd.f32 %v4549_v50, %v1530_v39 }
 0x3e5   : > { %v1339_v17 = vpack.c.bf16 %v1307_v19, %v1304_v57  ;;  %v1571_v21 = vpack.c.bf16 %v1539_v20, %v1536_v58 }
 0x3e6   : > { %v1338_v28 = vpack.c.bf16 %v1299_v8, %v1296_v0  ;;  %v1570_v29 = vpack.c.bf16 %v1531_v9, %v1528_v1 }
 0x3e7   : > { %1355 = vst.msk [vmem:[#allocation2 + $0x68] sm:$0xff] %vm654_vm2, %v1339_v17  ;;  %1587 = vst.msk [vmem:[#allocation3 + $0x68] sm:$0xff] %vm654_vm2, %v1571_v21 }
 0x3e8   : > { %1354 = vst.msk [vmem:[#allocation2 + $0x60] sm:$0xff] %vm654_vm2, %v1338_v28  ;;  %1586 = vst.msk [vmem:[#allocation3 + $0x60] sm:$0xff] %vm654_vm2, %v1570_v29  ;;  %v3526_v42 = vpop.f32.mrb[36].mxu0  ;;  %v3566_v43 = vpop.f32.mrb[36].mxu1 }
 0x3e9   : > { %v1311_v54 = vpop.f32.mrb[37].mxu0  ;;  %v1543_v55 = vpop.f32.mrb[37].mxu1  ;;  %v1320_v63 = vadd.f32 %v3526_v42, %v4544_v38  ;;  %v1552_v27 = vadd.f32 %v3566_v43, %v4549_v50 }
 0x3ea   : > { %v3527_v56 = vpop.f32.mrb[38].mxu0  ;;  %v3567_v62 = vpop.f32.mrb[38].mxu1  ;;  %v1312_v3 = vadd.f32 %v4544_v38, %v1311_v54  ;;  %v1544_v5 = vadd.f32 %v4549_v50, %v1543_v55 }
 0x3eb   : > { %v1323_v30 = vadd.f32 %v3527_v56, %v4544_v38  ;;  %v1555_v59 = vadd.f32 %v3567_v62, %v4549_v50  ;;  %v1314_v60 = vpop.f32.mrb[39].mxu0  ;;  %v1546_v61 = vpop.f32.mrb[39].mxu1 }
 0x3ec   : > { %v1315_v6 = vadd.f32 %v4544_v38, %v1314_v60  ;;  %v1547_v7 = vadd.f32 %v4549_v50, %v1546_v61 }
 0x3ed   : > { %v1341_v11 = vpack.c.bf16 %v1323_v30, %v1320_v63  ;;  %v1573_v12 = vpack.c.bf16 %v1555_v59, %v1552_v27 }
 0x3ee   : > { %v1340_v10 = vpack.c.bf16 %v1315_v6, %v1312_v3  ;;  %v1572_v13 = vpack.c.bf16 %v1547_v7, %v1544_v5 }
 0x3ef   : > { %1357 = vst.msk [vmem:[#allocation2 + $0x78] sm:$0xff] %vm654_vm2, %v1341_v11  ;;  %1589 = vst.msk [vmem:[#allocation3 + $0x78] sm:$0xff] %vm654_vm2, %v1573_v12 }
 0x3f0   : > { %1356 = vst.msk [vmem:[#allocation2 + $0x70] sm:$0xff] %vm654_vm2, %v1340_v10  ;;  %1588 = vst.msk [vmem:[#allocation3 + $0x70] sm:$0xff] %vm654_vm2, %v1572_v13 }
 0x3f1 PF: > { %v3890_v38 = vld [vmem:[%s5405_s4] sm:$0xff]   ;;  %s3167_s29 = sshll.u32 %s4024_s21, 7  ;;  %v4654_v50 = vld [vmem:[%s5405_s4 + $0x8] sm:$0xff]   ;;  %vm1831_vm5 = vcmask 7168   ;;  %v4662_v16 = vld [vmem:[%s5405_s4 + $0x10] sm:$0xff]   ;;  %vm1701_vm6 = vcmask 523264  }
 0x3f2   : > { %s4657_s14 = scalar_lea.vmem %s4155_s15, %s3167_s29  ;;  %3568 = vmatprep.subr.bf16.mxu0 %v3890_v38  ;;  %3800 = vmatprep.subr.bf16.mxu1 %v3890_v38  ;;  %v4672_v25 = vld [vmem:[#allocation4] ss:$0 sm:$0xff]  ;;  %v4050_v26 = vmov -inf   ;;  %v4694_v33 = vld [vmem:[#allocation5] ss:$0 sm:$0xff]  ;;  %v4051_v34 = vmov 0.0  }
 0x3f3   : > { %3569 = vmatpush3.bf16.msra.mxu0 %v3890_v38  ;;  %3804 = vmatpush3.bf16.msra.mxu1 %v3890_v38  ;;  %v4667_v18 = vld [vmem:[%s4657_s14] sm:$0xff]  ;;  %v4670_v24 = vld [vmem:[%s4657_s14 + $0x8] sm:$0xff]  ;;  %1832 = vst.msk [vmem:[#allocation6] sm:$0xff] %vm1831_vm5, %v4050_v26  ;;  %1833 = vst.msk [vmem:[#allocation6 + $0x8] sm:$0xff] %vm1831_vm5, %v4050_v26  ;;  %s4882_s22 = smov 0  }
 0x3f4   : > { %3570 = vmatprep.subr.bf16.mxu0 %v4654_v50  ;;  %3801 = vmatprep.subr.bf16.mxu1 %v4654_v50  ;;  %1834 = vst.msk [vmem:[#allocation6 + $0x10] sm:$0xff] %vm1831_vm5, %v4050_v26  ;;  %1835 = vst.msk [vmem:[#allocation6 + $0x18] sm:$0xff] %vm1831_vm5, %v4050_v26  ;;  %v1615_v31 = vmul.f32 %v4672_v25, %v4667_v18  ;;  %v1616_v32 = vmul.f32 %v4672_v25, %v4670_v24  ;;  %v4729_v35 = vld [vmem:[%s4657_s14 + $0x40] sm:$0xff]  ;;  %v4732_v40 = vld [vmem:[%s4657_s14 + $0x48] sm:$0xff] }
 0x3f5   : > { %1836 = vst.msk [vmem:[#allocation6 + $0x20] sm:$0xff] %vm1831_vm5, %v4050_v26  ;;  %1837 = vst.msk [vmem:[#allocation6 + $0x28] sm:$0xff] %vm1831_vm5, %v4050_v26  ;;  %v1623_v41 = vmul.f32 %v4672_v25, %v4729_v35  ;;  %v1624_v44 = vmul.f32 %v4672_v25, %v4732_v40  ;;  %v4739_v45 = vld [vmem:[%s4657_s14 + $0x10] sm:$0xff]  ;;  %v4742_v46 = vld [vmem:[%s4657_s14 + $0x18] sm:$0xff] }
 0x3f6   : > { %1838 = vst.msk [vmem:[#allocation6 + $0x30] sm:$0xff] %vm1831_vm5, %v4050_v26  ;;  %1839 = vst.msk [vmem:[#allocation6 + $0x38] sm:$0xff] %vm1831_vm5, %v4050_v26  ;;  %v4745_v47 = vld [vmem:[%s4657_s14 + $0x50] sm:$0xff]  ;;  %v1638_v51 = vadd.f32 %v4694_v33, %v1615_v31  ;;  %v1639_v52 = vadd.f32 %v4694_v33, %v1616_v32  ;;  %v1617_v2 = vmul.f32 %v4672_v25, %v4739_v45  ;;  %v4754_v4 = vld [vmem:[%s4657_s14 + $0x58] sm:$0xff] }
 0x3f7   : > { %1840 = vst.msk [vmem:[#allocation6 + $0x40] sm:$0xff] %vm1831_vm5, %v4050_v26  ;;  %1841 = vst.msk [vmem:[#allocation6 + $0x48] sm:$0xff] %vm1831_vm5, %v4050_v26  ;;  %3571 = vmatpush3.bf16.msra.mxu0 %v4654_v50  ;;  %3805 = vmatpush3.bf16.msra.mxu1 %v4654_v50  ;;  %v4757_v14 = vld [vmem:[%s4657_s14 + $0x20] sm:$0xff]  ;;  %v4760_v15 = vld [vmem:[%s4657_s14 + $0x28] sm:$0xff]  ;;  %v1646_v23 = vadd.f32 %v4694_v33, %v1623_v41  ;;  %v1647_v37 = vadd.f32 %v4694_v33, %v1624_v44 }
 0x3f8   : > { %1842 = vst.msk [vmem:[#allocation6 + $0x50] sm:$0xff] %vm1831_vm5, %v4050_v26  ;;  %1843 = vst.msk [vmem:[#allocation6 + $0x58] sm:$0xff] %vm1831_vm5, %v4050_v26  ;;  %3572 = vmatprep.subr.bf16.mxu0 %v4662_v16  ;;  %3802 = vmatprep.subr.bf16.mxu1 %v4662_v16  ;;  %v3893_v22 = vld [vmem:[%s5405_s4 + $0x18] sm:$0xff]   ;;  %v1618_v53 = vmul.f32 %v4672_v25, %v4742_v46  ;;  %v4772_v48 = vld [vmem:[%s4657_s14 + $0x60] sm:$0xff]  ;;  %v1654_v49 = vpack.c.bf16 %v1639_v52, %v1638_v51 }
 0x3f9   : > { %1844 = vst.msk [vmem:[#allocation6 + $0x60] sm:$0xff] %vm1831_vm5, %v4050_v26  ;;  %1845 = vst.msk [vmem:[#allocation6 + $0x68] sm:$0xff] %vm1831_vm5, %v4050_v26  ;;  %v1640_v57 = vadd.f32 %v4694_v33, %v1617_v2  ;;  %v1625_v58 = vmul.f32 %v4672_v25, %v4745_v47  ;;  %v1626_v19 = vmul.f32 %v4672_v25, %v4754_v4  ;;  %v4785_v1 = vld [vmem:[%s4657_s14 + $0x68] sm:$0xff]  ;;  %v4794_v21 = vld [vmem:[%s4657_s14 + $0x30] sm:$0xff] }
 0x3fa   : > { %1846 = vst.msk [vmem:[#allocation6 + $0x70] sm:$0xff] %vm1831_vm5, %v4050_v26  ;;  %1847 = vst.msk [vmem:[#allocation6 + $0x78] sm:$0xff] %vm1831_vm5, %v4050_v26  ;;  %v1658_v20 = vpack.c.bf16 %v1647_v37, %v1646_v23  ;;  %v1641_v36 = vadd.f32 %v4694_v33, %v1618_v53  ;;  %v1619_v39 = vmul.f32 %v4672_v25, %v4757_v14  ;;  %v4797_v28 = vld [vmem:[%s4657_s14 + $0x38] sm:$0xff]  ;;  %v4800_v29 = vld [vmem:[%s4657_s14 + $0x70] sm:$0xff]  ;;  %3576 = vmatprep.mubr.msk.bf16.mxu0 %vm1701_vm6, %v1654_v49 }
 0x3fb   : > { %1848 = vst.msk [vmem:[#allocation7] sm:$0xff] %vm1831_vm5, %v4051_v34  ;;  %1849 = vst.msk [vmem:[#allocation7 + $0x8] sm:$0xff] %vm1831_vm5, %v4051_v34  ;;  %v1620_v0 = vmul.f32 %v4672_v25, %v4760_v15  ;;  %3573 = vmatpush3.bf16.msra.mxu0 %v4662_v16  ;;  %3806 = vmatpush3.bf16.msra.mxu1 %v4662_v16  ;;  %v1648_v8 = vadd.f32 %v4694_v33, %v1625_v58  ;;  %v4805_v54 = vld [vmem:[%s4657_s14 + $0x78] sm:$0xff]  ;;  %v3170_v50 = vld [vmem:[%s5406_s5] ss:$0 sm:$0xff] }
 0x3fc   : > { %1850 = vst.msk [vmem:[#allocation7 + $0x10] sm:$0xff] %vm1831_vm5, %v4051_v34  ;;  %1851 = vst.msk [vmem:[#allocation7 + $0x18] sm:$0xff] %vm1831_vm5, %v4051_v34  ;;  %v1649_v9 = vadd.f32 %v4694_v33, %v1626_v19  ;;  %v1627_v17 = vmul.f32 %v4672_v25, %v4772_v48  ;;  %3574 = vmatprep.subr.bf16.mxu0 %v3893_v22  ;;  %3803 = vmatprep.subr.bf16.mxu1 %v3893_v22 }
 0x3fd   : > { %1852 = vst.msk [vmem:[#allocation7 + $0x20] sm:$0xff] %vm1831_vm5, %v4051_v34  ;;  %1853 = vst.msk [vmem:[#allocation7 + $0x28] sm:$0xff] %vm1831_vm5, %v4051_v34  ;;  %v1642_v42 = vadd.f32 %v4694_v33, %v1619_v39  ;;  %v1643_v43 = vadd.f32 %v4694_v33, %v1620_v0  ;;  %3584 = vmatprep.mubr.msk.bf16.mxu1 %vm1701_vm6, %v1658_v20  ;;  %v1655_v55 = vpack.c.bf16 %v1641_v36, %v1640_v57 }
 0x3fe   : > { %1854 = vst.msk [vmem:[#allocation7 + $0x30] sm:$0xff] %vm1831_vm5, %v4051_v34  ;;  %1855 = vst.msk [vmem:[#allocation7 + $0x38] sm:$0xff] %vm1831_vm5, %v4051_v34  ;;  %v1628_v56 = vmul.f32 %v4672_v25, %v4785_v1  ;;  %v1650_v62 = vadd.f32 %v4694_v33, %v1627_v17  ;;  %v1659_v63 = vpack.c.bf16 %v1649_v9, %v1648_v8 }
 0x3ff   : > { %1856 = vst.msk [vmem:[#allocation7 + $0x40] sm:$0xff] %vm1831_vm5, %v4051_v34  ;;  %1857 = vst.msk [vmem:[#allocation7 + $0x48] sm:$0xff] %vm1831_vm5, %v4051_v34  ;;  %v1621_v27 = vmul.f32 %v4672_v25, %v4794_v21  ;;  %v1622_v30 = vmul.f32 %v4672_v25, %v4797_v28  ;;  %v1629_v59 = vmul.f32 %v4672_v25, %v4800_v29  ;;  %3575 = vmatpush3.bf16.msra.mxu0 %v3893_v22 }
 0x400   : > { %1858 = vst.msk [vmem:[#allocation7 + $0x50] sm:$0xff] %vm1831_vm5, %v4051_v34  ;;  %1859 = vst.msk [vmem:[#allocation7 + $0x58] sm:$0xff] %vm1831_vm5, %v4051_v34  ;;  %3807 = vmatpush3.bf16.msra.mxu1 %v3893_v22  ;;  %v1656_v60 = vpack.c.bf16 %v1643_v43, %v1642_v42  ;;  %v1651_v61 = vadd.f32 %v4694_v33, %v1628_v56  ;;  %v1630_v3 = vmul.f32 %v4672_v25, %v4805_v54 }
 0x401   : > { %1860 = vst.msk [vmem:[#allocation7 + $0x60] sm:$0xff] %vm1831_vm5, %v4051_v34  ;;  %1861 = vst.msk [vmem:[#allocation7 + $0x68] sm:$0xff] %vm1831_vm5, %v4051_v34  ;;  %v1644_v6 = vadd.f32 %v4694_v33, %v1621_v27  ;;  %v1645_v7 = vadd.f32 %v4694_v33, %v1622_v30  ;;  %v1652_v11 = vadd.f32 %v4694_v33, %v1629_v59 }
 0x402   : > { %1862 = vst.msk [vmem:[#allocation7 + $0x70] sm:$0xff] %vm1831_vm5, %v4051_v34  ;;  %1863 = vst.msk [vmem:[#allocation7 + $0x78] sm:$0xff] %vm1831_vm5, %v4051_v34  ;;  %v1660_v5 = vpack.c.bf16 %v1651_v61, %v1650_v62  ;;  %3577 = vmatmul.mubr.msk.bf16.vlgmr.msra.gmra.mrb[0].mxu0 %vm1701_vm6, %v1655_v55  ;;  %v1653_v12 = vadd.f32 %v4694_v33, %v1630_v3 }
 0x403   : > { %1864 = vst.msk [vmem:[#allocation8] sm:$0xff] %vm1701_vm6, %v4051_v34  ;;  %1865 = vst.msk [vmem:[#allocation8 + $0x8] sm:$0xff] %vm1701_vm6, %v4051_v34  ;;  %3585 = vmatmul.mubr.msk.bf16.vlgmr.msra.gmra.mrb[0].mxu1 %vm1701_vm6, %v1659_v63  ;;  %3580 = vmatprep.mubr.msk.bf16.mxu0 %vm1701_vm6, %v1656_v60  ;;  %v1657_v10 = vpack.c.bf16 %v1645_v7, %v1644_v6 }
 0x404   : > { %1866 = vst.msk [vmem:[#allocation8 + $0x10] sm:$0xff] %vm1701_vm6, %v4051_v34  ;;  %1867 = vst.msk [vmem:[#allocation8 + $0x18] sm:$0xff] %vm1701_vm6, %v4051_v34  ;;  %3588 = vmatprep.mubr.msk.bf16.mxu1 %vm1701_vm6, %v1660_v5  ;;  %v1661_v13 = vpack.c.bf16 %v1653_v12, %v1652_v11 }
 0x405   : > { %1868 = vst.msk [vmem:[#allocation8 + $0x20] sm:$0xff] %vm1701_vm6, %v4051_v34  ;;  %1869 = vst.msk [vmem:[#allocation8 + $0x28] sm:$0xff] %vm1701_vm6, %v4051_v34 }
 0x406   : > { %1870 = vst.msk [vmem:[#allocation8 + $0x30] sm:$0xff] %vm1701_vm6, %v4051_v34  ;;  %1871 = vst.msk [vmem:[#allocation8 + $0x38] sm:$0xff] %vm1701_vm6, %v4051_v34 }
 0x407   : > { %1872 = vst.msk [vmem:[#allocation8 + $0x40] sm:$0xff] %vm1701_vm6, %v4051_v34  ;;  %1873 = vst.msk [vmem:[#allocation8 + $0x48] sm:$0xff] %vm1701_vm6, %v4051_v34 }
 0x408   : > { %1874 = vst.msk [vmem:[#allocation8 + $0x50] sm:$0xff] %vm1701_vm6, %v4051_v34  ;;  %1875 = vst.msk [vmem:[#allocation8 + $0x58] sm:$0xff] %vm1701_vm6, %v4051_v34 }
 0x409   : > { %1876 = vst.msk [vmem:[#allocation8 + $0x60] sm:$0xff] %vm1701_vm6, %v4051_v34  ;;  %1877 = vst.msk [vmem:[#allocation8 + $0x68] sm:$0xff] %vm1701_vm6, %v4051_v34 }
 0x40a   : > { %1878 = vst.msk [vmem:[#allocation8 + $0x70] sm:$0xff] %vm1701_vm6, %v4051_v34  ;;  %1879 = vst.msk [vmem:[#allocation8 + $0x78] sm:$0xff] %vm1701_vm6, %v4051_v34  ;;  %3581 = vmatmul.mubr.msk.bf16.gmra.mrb[4].mxu0 %vm1701_vm6, %v1657_v10 }
 0x40b   : > { %5436 = vst [vmem:[#allocation9_spill] sm:$0xff] %v4772_v48  ;;  %5437 = vst [vmem:[#allocation10_spill] sm:$0xff] %v4785_v1  ;;  %3589 = vmatmul.mubr.msk.bf16.gmra.mrb[4].mxu1 %vm1701_vm6, %v1661_v13 }
 0x40c   : > { %5438 = vst [vmem:[#allocation11_spill] sm:$0xff] %v4800_v29  ;;  %5439 = vst [vmem:[#allocation12_spill] sm:$0xff] %v4805_v54 }
 0x4d5   : > { %v3578_v38 = vpop.f32.mrb[0].mxu0 }
 0x4d6   : > { %v3586_v16 = vpop.f32.mrb[0].mxu1  ;;  %v1760_v25 = vpop.f32.mrb[1].mxu0  ;;  %v4834_v33 = vadd.f32 %v3578_v38, %v3170_v50 }
 0x4d7   : > { %v1792_v26 = vpop.f32.mrb[1].mxu1  ;;  %v3579_v31 = vpop.f32.mrb[2].mxu0  ;;  %v4836_v34 = vadd.f32 %v3586_v16, %v3170_v50  ;;  %v4842_v2 = vadd.f32 %v3170_v50, %v1760_v25 }
 0x4d8   : > { %v3587_v32 = vpop.f32.mrb[2].mxu1  ;;  %5440 = vst [vmem:[#allocation13_spill] sm:$0xff] %v4834_v33  ;;  %v4838_v41 = vadd.f32 %v3579_v31, %v3170_v50  ;;  %v1763_v51 = vpop.f32.mrb[3].mxu0  ;;  %v4844_v22 = vadd.f32 %v3170_v50, %v1792_v26 }
 0x4d9   : > { %5441 = vst [vmem:[#allocation14_spill] sm:$0xff] %v4836_v34  ;;  %v4840_v44 = vadd.f32 %v3587_v32, %v3170_v50  ;;  %v1795_v52 = vpop.f32.mrb[3].mxu1  ;;  %5444 = vst [vmem:[#allocation17_spill] sm:$0xff] %v4842_v2  ;;  %v4846_v23 = vadd.f32 %v3170_v50, %v1763_v51 }
 0x4da   : > { %5442 = vst [vmem:[#allocation15_spill] sm:$0xff] %v4838_v41  ;;  %5445 = vst [vmem:[#allocation18_spill] sm:$0xff] %v4844_v22  ;;  %v4848_v37 = vadd.f32 %v3170_v50, %v1795_v52 }
 0x4db   : > { %5443 = vst [vmem:[#allocation16_spill] sm:$0xff] %v4840_v44  ;;  %5446 = vst [vmem:[#allocation19_spill] sm:$0xff] %v4846_v23 }
 0x4dc   : > { %5447 = vst [vmem:[#allocation20_spill] sm:$0xff] %v4848_v37 }
 0x4dd   : > { %v3582_v19 = vpop.f32.mrb[4].mxu0 }
 0x4de   : > { %v3590_v20 = vpop.f32.mrb[4].mxu1  ;;  %v1776_v36 = vpop.f32.mrb[5].mxu0  ;;  %v4858_v9 = vadd.f32 %v3582_v19, %v3170_v50 }
 0x4df   : > { %v1808_v39 = vpop.f32.mrb[5].mxu1  ;;  %v3583_v0 = vpop.f32.mrb[6].mxu0  ;;  %v4860_v17 = vadd.f32 %v3590_v20, %v3170_v50  ;;  %v4866_v62 = vadd.f32 %v3170_v50, %v1776_v36 }
 0x4e0   : > { %v3591_v8 = vpop.f32.mrb[6].mxu1  ;;  %5448 = vst [vmem:[#allocation21_spill] sm:$0xff] %v4858_v9  ;;  %v4862_v42 = vadd.f32 %v3583_v0, %v3170_v50  ;;  %v1779_v55 = vpop.f32.mrb[7].mxu0  ;;  %v4868_v63 = vadd.f32 %v3170_v50, %v1808_v39 }
 0x4e1   : > { %5449 = vst [vmem:[#allocation22_spill] sm:$0xff] %v4860_v17  ;;  %v4864_v43 = vadd.f32 %v3591_v8, %v3170_v50  ;;  %v1811_v56 = vpop.f32.mrb[7].mxu1  ;;  %5452 = vst [vmem:[#allocation25_spill] sm:$0xff] %v4866_v62  ;;  %v4870_v27 = vadd.f32 %v3170_v50, %v1779_v55 }
 0x4e2   : > { %5450 = vst [vmem:[#allocation23_spill] sm:$0xff] %v4862_v42  ;;  %5453 = vst [vmem:[#allocation26_spill] sm:$0xff] %v4868_v63  ;;  %v4872_v30 = vadd.f32 %v3170_v50, %v1811_v56 }
 0x4e3   : > { %5451 = vst [vmem:[#allocation24_spill] sm:$0xff] %v4864_v43  ;;  %5454 = vst [vmem:[#allocation27_spill] sm:$0xff] %v4870_v27 }
 0x4e4   : > { %5455 = vst [vmem:[#allocation28_spill] sm:$0xff] %v4872_v30 }
 0x4e5 LB: >> { %v5456_v23 = vld [vmem:[#allocation19_spill] sm:$0xff]  ;;  %v5457_v2 = vld [vmem:[#allocation17_spill] sm:$0xff]  ;;  %s3183_s28 = sshll.u32 %s4044_s22, 7  ;;  %v5468_v37 = vld [vmem:[#allocation20_spill] sm:$0xff]  ;;  %s1885_s22 = sadd.s32 1, %s4044_s22   ;;  %s4044_s22 = sphi %s4882_s22, %s1885_s22  }
 0x4e6   : >> { %v5458_v57 = vpack.c.bf16 %v5456_v23, %v5457_v2  ;;  %s4892_s29 = sshra.s32 %s3183_s28, 4  ;;  %v5459_v41 = vld [vmem:[#allocation15_spill] sm:$0xff]  ;;  %v5460_v33 = vld [vmem:[#allocation13_spill] sm:$0xff]  ;;  %v5469_v22 = vld [vmem:[#allocation18_spill] sm:$0xff]  ;;  %p1882_p8 = scmp.ge.s32.totalorder %s1885_s22, 2  }
 0x4e7   : >> { %s3184_s30 = sshll.u32 %s4892_s29, 3  ;;  %v5461_v53 = vpack.c.bf16 %v5459_v41, %v5460_v33  ;;  %v5466_v9 = vld [vmem:[#allocation21_spill] sm:$0xff]  ;;  %v5470_v58 = vpack.c.bf16 %v5468_v37, %v5469_v22  ;;  %v5471_v44 = vld [vmem:[#allocation16_spill] sm:$0xff]  ;;  %v5472_v34 = vld [vmem:[#allocation14_spill] sm:$0xff] }
 0x4e8   : >> { %3608 = vmatprep.mubr.msk.bf16.mxu0 %vm1701_vm6, %v5458_v57  ;;  %s1890_s13 = scalar_lea.vmem [#allocation2], %s3184_s30  ;;  %v5463_v62 = vld [vmem:[#allocation25_spill] sm:$0xff]  ;;  %v5473_v49 = vpack.c.bf16 %v5471_v44, %v5472_v34  ;;  %v5478_v17 = vld [vmem:[#allocation22_spill] sm:$0xff]  ;;  %s4991_s14 = scalar_lea.vmem [#allocation3], %s3184_s30  ;;  %v5059_v23 = vld [vmem:[#allocation6 + $0x58] sm:$0xff] }
 0x4e9   : >> { %v1891_v5 = vld [vmem:[%s1890_s13] sm:$0xff]  ;;  %v1892_v6 = vld [vmem:[%s1890_s13 + $0x8] sm:$0xff]  ;;  %v1893_v12 = vld [vmem:[%s1890_s13 + $0x10] sm:$0xff] }
 0x4ea   : >> { %3816 = vmatprep.subr.msk.bf16.mxu0 %vm1701_vm6, %v1891_v5  ;;  %v1934_v7 = vsel %vm1701_vm6, %v1891_v5, 0  ;;  %v1937_v11 = vsel %vm1701_vm6, %v1892_v6, 0  ;;  %v1940_v10 = vsel %vm1701_vm6, %v1893_v12, 0  ;;  %v1894_v13 = vld [vmem:[%s1890_s13 + $0x18] sm:$0xff]  ;;  %v1895_v50 = vld [vmem:[%s1890_s13 + $0x20] sm:$0xff]  ;;  %v1896_v25 = vld [vmem:[%s1890_s13 + $0x28] sm:$0xff] }
 0x4eb   : >> { %3593 = vmatpush3.bf16.xpose.msra.mxu0 %v1934_v7  ;;  %v1943_v38 = vsel %vm1701_vm6, %v1894_v13, 0  ;;  %v1946_v16 = vsel %vm1701_vm6, %v1895_v50, 0  ;;  %v1949_v26 = vsel %vm1701_vm6, %v1896_v25, 0  ;;  %v1897_v31 = vld [vmem:[%s1890_s13 + $0x30] sm:$0xff]  ;;  %v1898_v51 = vld [vmem:[%s1890_s13 + $0x38] sm:$0xff]  ;;  %v5025_v57 = vld [vmem:[#allocation6 + $0x20] sm:$0xff] }
 0x4ec   : >> { %3817 = vmatprep.subr.msk.bf16.mxu0 %vm1701_vm6, %v1892_v6  ;;  %v1952_v32 = vsel %vm1701_vm6, %v1897_v31, 0  ;;  %v1955_v52 = vsel %vm1701_vm6, %v1898_v51, 0  ;;  %v5462_v27 = vld [vmem:[#allocation27_spill] sm:$0xff]  ;;  %v5474_v30 = vld [vmem:[#allocation28_spill] sm:$0xff]  ;;  %v5475_v63 = vld [vmem:[#allocation26_spill] sm:$0xff]  ;;  %v4052_v6 = vmov 0  }
 0x4ed   : >> { %v5464_v61 = vpack.c.bf16 %v5462_v27, %v5463_v62  ;;  %v5465_v42 = vld [vmem:[#allocation23_spill] sm:$0xff]  ;;  %v5476_v3 = vpack.c.bf16 %v5474_v30, %v5475_v63  ;;  %v5477_v43 = vld [vmem:[#allocation24_spill] sm:$0xff]  ;;  %3895 = vset.pattern.permute.xlu1 %v4052_v6  ;;  %3894 = vset.pattern.permute.xlu0 %v4052_v6  ;;  %v5043_v2 = vld [vmem:[#allocation6 + $0x28] sm:$0xff] }
 0x4ee   : >> { %v5467_v59 = vpack.c.bf16 %v5465_v42, %v5466_v9  ;;  %v5479_v60 = vpack.c.bf16 %v5477_v43, %v5478_v17  ;;  %v1905_v9 = vld [vmem:[%s4991_s14 + $0x20] sm:$0xff]  ;;  %v1906_v27 = vld [vmem:[%s4991_s14 + $0x28] sm:$0xff]  ;;  %v5070_v33 = vld [vmem:[#allocation6 + $0x50] sm:$0xff] }
 0x4ef   : >> { %v5054_v22 = vld [vmem:[#allocation6 + $0x40] sm:$0xff]  ;;  %v5075_v34 = vld [vmem:[#allocation6 + $0x48] sm:$0xff]  ;;  %v5093_v44 = vld [vmem:[#allocation6 + $0x78] sm:$0xff] }
 0x4f0   : >> { %v1907_v37 = vld [vmem:[%s4991_s14 + $0x30] sm:$0xff]  ;;  %v5088_v43 = vld [vmem:[#allocation6 + $0x60] sm:$0xff]  ;;  %v1908_v62 = vld [vmem:[%s4991_s14 + $0x38] sm:$0xff] }
 0x4f1   : >> { %v5107_v1 = vld [vmem:[#allocation6 + $0x70] sm:$0xff]  ;;  %v2067_v54 = vld [vmem:[#allocation6 + $0x68] sm:$0xff] }
 0x4f3   : >> { %3595 = vmatpush3.bf16.xpose.msra.mxu0 %v1937_v11 }
 0x4f4   : >> { %3818 = vmatprep.subr.msk.bf16.mxu0 %vm1701_vm6, %v1893_v12 }
 0x4fb   : >> { %3597 = vmatpush3.bf16.xpose.msra.mxu0 %v1940_v10 }
 0x4fc   : >> { %3819 = vmatprep.subr.msk.bf16.mxu0 %vm1701_vm6, %v1894_v13 }
 0x503   : >> { %3599 = vmatpush3.bf16.xpose.msra.mxu0 %v1943_v38 }
 0x504   : >> { %3820 = vmatprep.subr.msk.bf16.mxu0 %vm1701_vm6, %v1895_v50 }
 0x50b   : >> { %3601 = vmatpush3.bf16.xpose.msra.mxu0 %v1946_v16  ;;  %v1901_v16 = vld [vmem:[%s4991_s14] sm:$0xff] }
 0x50c   : >> { %3821 = vmatprep.subr.msk.bf16.mxu0 %vm1701_vm6, %v1896_v25  ;;  %v1902_v25 = vld [vmem:[%s4991_s14 + $0x8] sm:$0xff]  ;;  %3624 = vmatprep.subr.bf16.mxu1 %v1901_v16 }
 0x50d   : >> { %3625 = vmatpush3.bf16.msra.mxu1 %v1901_v16  ;;  %v5010_v16 = vld [vmem:[#allocation6 + $0x8] sm:$0xff] }
 0x50e   : >> { %3626 = vmatprep.subr.bf16.mxu1 %v1902_v25 }
 0x511   : >> { %3627 = vmatpush3.bf16.msra.mxu1 %v1902_v25 }
 0x513   : >> { %3603 = vmatpush3.bf16.xpose.msra.mxu0 %v1949_v26  ;;  %v4995_v26 = vld [vmem:[#allocation6 + $0x10] sm:$0xff] }
 0x514   : >> { %3822 = vmatprep.subr.msk.bf16.mxu0 %vm1701_vm6, %v1897_v31  ;;  %v4997_v31 = vld [vmem:[#allocation6] sm:$0xff] }
 0x51b   : >> { %3605 = vmatpush3.bf16.xpose.msra.mxu0 %v1952_v32 }
 0x51c   : >> { %3823 = vmatprep.subr.msk.bf16.mxu0 %vm1701_vm6, %v1898_v51 }
 0x523   : >> { %3607 = vmatpush3.bf16.xpose.msra.mxu0 %v1955_v52 }
 0x52a   : >> { %3609 = vmatmul.mubr.msk.bf16.vlgmr.msra.gmra.mrb[0].mxu0 %vm1701_vm6, %v5461_v53 }
 0x52b   : >> { %3612 = vmatprep.mubr.msk.bf16.mxu0 %vm1701_vm6, %v5464_v61  ;;  %v5039_v61 = vld [vmem:[#allocation6 + $0x30] sm:$0xff] }
 0x532   : >> { %3613 = vmatmul.mubr.msk.bf16.gmra.mrb[4].mxu0 %vm1701_vm6, %v5467_v59 }
 0x533   : >> { %3616 = vmatprep.mubr.msk.bf16.mxu0 %vm1701_vm6, %v5470_v58  ;;  %v5029_v58 = vld [vmem:[#allocation6 + $0x38] sm:$0xff] }
 0x53a   : >> { %3617 = vmatmul.mubr.msk.bf16.gmra.mrb[8].mxu0 %vm1701_vm6, %v5473_v49 }
 0x53b   : >> { %3620 = vmatprep.mubr.msk.bf16.mxu0 %vm1701_vm6, %v5476_v3  ;;  %v5005_v3 = vld [vmem:[#allocation6 + $0x18] sm:$0xff] }
 0x542   : >> { %3621 = vmatmul.mubr.msk.bf16.gmra.mrb[12].mxu0 %vm1701_vm6, %v5479_v60 }
 0x5fd   : >> { %v4941_v19 = vpop.f32.mrb[0].mxu0 }
 0x5fe   : >> { %2074 = vmax.xlane.f32.xlu1 %v4941_v19  ;;  %v4944_v20 = vpop.f32.mrb[1].mxu0 }
 0x5ff   : >> { %2070 = vmax.xlane.f32.xlu0 %v4944_v20  ;;  %v4947_v36 = vpop.f32.mrb[2].mxu0 }
 0x600   : >> { %v4949_v39 = vpop.f32.mrb[3].mxu0 }
 0x602   : >> { %2076 = vmax.xlane.f32.xlu1 %v4947_v36 }
 0x603   : >> { %2072 = vmax.xlane.f32.xlu0 %v4949_v39 }
 0x605   : >> { %v4953_v0 = vpop.f32.mrb[4].mxu0 }
 0x606   : >> { %v4955_v8 = vpop.f32.mrb[5].mxu0 }
 0x607   : >> { %2078 = vmax.xlane.f32.xlu0 %v4955_v8  ;;  %v4958_v55 = vpop.f32.mrb[6].mxu0 }
 0x608   : >> { %2084 = vmax.xlane.f32.xlu1 %v4958_v55  ;;  %v4961_v56 = vpop.f32.mrb[7].mxu0 }
 0x60b   : >> { %2082 = vmax.xlane.f32.xlu0 %v4953_v0 }
 0x60c   : >> { %2080 = vmax.xlane.f32.xlu1 %v4961_v56 }
 0x60d   : >> { %v4965_v5 = vpop.f32.mrb[8].mxu0 }
 0x60e   : >> { %v4967_v7 = vpop.f32.mrb[9].mxu0 }
 0x60f   : >> { %v4969_v11 = vpop.f32.mrb[10].mxu0  ;;  %2086 = vmax.xlane.f32.xlu0 %v4967_v7 }
 0x610   : >> { %2092 = vmax.xlane.f32.xlu1 %v4969_v11  ;;  %v4973_v12 = vpop.f32.mrb[11].mxu0 }
 0x613   : >> { %2090 = vmax.xlane.f32.xlu0 %v4965_v5 }
 0x614   : >> { %2088 = vmax.xlane.f32.xlu1 %v4973_v12 }
 0x615   : >> { %v4977_v10 = vpop.f32.mrb[12].mxu0 }
 0x616   : >> { %v4979_v13 = vpop.f32.mrb[13].mxu0 }
 0x617   : >> { %v4981_v38 = vpop.f32.mrb[14].mxu0  ;;  %2094 = vmax.xlane.f32.xlu0 %v4979_v13 }
 0x618   : >> { %2100 = vmax.xlane.f32.xlu1 %v4981_v38  ;;  %v4985_v50 = vpop.f32.mrb[15].mxu0 }
 0x61b   : >> { %2098 = vmax.xlane.f32.xlu0 %v4977_v10 }
 0x61c   : >> { %2096 = vmax.xlane.f32.xlu1 %v4985_v50 }
 0x68b   : >> { %v2075_v32 = vpop.xlane.xlu1 %2074 }
 0x68c   : >> { %v5000_v51 = vmax.f32 %v4995_v26, %v2075_v32  ;;  %v2071_v52 = vpop.xlane.xlu0 %2070  ;;  %v1903_v32 = vld [vmem:[%s4991_s14 + $0x10] sm:$0xff] }
 0x68d   : >> { %v5003_v6 = vmax.f32 %v4997_v31, %v2071_v52  ;;  %3628 = vmatprep.subr.bf16.mxu1 %v1903_v32 }
 0x68e   : >> { %2641 = vst.msk [vmem:[#allocation6 + $0x10] sm:$0xff] %vm1831_vm5, %v5000_v51  ;;  %2178 = vperm.xlu1 %3895, %v5000_v51   ;;  %3629 = vmatpush3.bf16.msra.mxu1 %v1903_v32 }
 0x68f   : >> { %2639 = vst.msk [vmem:[#allocation6] sm:$0xff] %vm1831_vm5, %v5003_v6  ;;  %v2077_v25 = vpop.xlane.xlu1 %2076  ;;  %2168 = vperm.xlu0 %3894, %v5003_v6  }
 0x690   : >> { %v5017_v52 = vmax.f32 %v5005_v3, %v2077_v25  ;;  %v2073_v49 = vpop.xlane.xlu0 %2072  ;;  %v1904_v25 = vld [vmem:[%s4991_s14 + $0x18] sm:$0xff] }
 0x691   : >> { %v5020_v53 = vmax.f32 %v5010_v16, %v2073_v49  ;;  %3630 = vmatprep.subr.bf16.mxu1 %v1904_v25 }
 0x692   : >> { %2642 = vst.msk [vmem:[#allocation6 + $0x18] sm:$0xff] %vm1831_vm5, %v5017_v52  ;;  %2183 = vperm.xlu1 %3895, %v5017_v52   ;;  %3631 = vmatpush3.bf16.msra.mxu1 %v1904_v25 }
 0x693   : >> { %2640 = vst.msk [vmem:[#allocation6 + $0x8] sm:$0xff] %vm1831_vm5, %v5020_v53  ;;  %3632 = vmatprep.subr.bf16.mxu1 %v1905_v9 }
 0x694   : >> { %v2079_v59 = vpop.xlane.xlu0 %2078 }
 0x695   : >> { %v5033_v49 = vmax.f32 %v5025_v57, %v2079_v59  ;;  %v2085_v32 = vpop.xlane.xlu1 %2084 }
 0x696   : >> { %v5036_v60 = vmax.f32 %v5029_v58, %v2085_v32  ;;  %2173 = vperm.xlu1 %3895, %v5020_v53   ;;  %3633 = vmatpush3.bf16.msra.mxu1 %v1905_v9 }
 0x697   : >> { %2643 = vst.msk [vmem:[#allocation6 + $0x20] sm:$0xff] %vm1831_vm5, %v5033_v49  ;;  %3634 = vmatprep.subr.bf16.mxu1 %v1906_v27 }
 0x698   : >> { %2646 = vst.msk [vmem:[#allocation6 + $0x38] sm:$0xff] %vm1831_vm5, %v5036_v60  ;;  %v2083_v59 = vpop.xlane.xlu0 %2082 }
 0x699   : >> { %v5049_v25 = vmax.f32 %v5039_v61, %v2083_v59  ;;  %v2081_v32 = vpop.xlane.xlu1 %2080 }
 0x69a   : >> { %v5052_v17 = vmax.f32 %v5043_v2, %v2081_v32  ;;  %3635 = vmatpush3.bf16.msra.mxu1 %v1906_v27  ;;  %v2118_v27 = vsub.f32 %v4997_v31, %v5003_v6  ;;  %v2121_v6 = vsub.f32 %v5005_v3, %v5017_v52 }
 0x69b   : >> { %2645 = vst.msk [vmem:[#allocation6 + $0x30] sm:$0xff] %vm1831_vm5, %v5049_v25  ;;  %2198 = vperm.xlu1 %3895, %v5049_v25   ;;  %3636 = vmatprep.subr.bf16.mxu1 %v1907_v37 }
 0x69c   : >> { %2644 = vst.msk [vmem:[#allocation6 + $0x28] sm:$0xff] %vm1831_vm5, %v5052_v17  ;;  %v2087_v59 = vpop.xlane.xlu0 %2086  ;;  %v2140_v52 = vmul.f32 1.442695, %v2121_v6 }
 0x69d   : >> { %v2093_v9 = vpop.xlane.xlu1 %2092  ;;  %v5065_v32 = vmax.f32 %v5054_v22, %v2087_v59 }
 0x69e   : >> { %v5068_v30 = vmax.f32 %v5059_v23, %v2093_v9  ;;  %3637 = vmatpush3.bf16.msra.mxu1 %v1907_v37  ;;  %v2134_v37 = vmul.f32 1.442695, %v2118_v27  ;;  %v2119_v27 = vsub.f32 %v5010_v16, %v5020_v53  ;;  %v2120_v16 = vsub.f32 %v4995_v26, %v5000_v51 }
 0x69f   : >> { %2647 = vst.msk [vmem:[#allocation6 + $0x40] sm:$0xff] %vm1831_vm5, %v5065_v32  ;;  %2188 = vperm.xlu1 %3895, %v5033_v49   ;;  %3638 = vmatprep.subr.bf16.mxu1 %v1908_v62 }
 0x6a0   : >> { %2650 = vst.msk [vmem:[#allocation6 + $0x58] sm:$0xff] %vm1831_vm5, %v5068_v30  ;;  %v2091_v59 = vpop.xlane.xlu0 %2090  ;;  %3896 = vpow2.f32 %v2134_v37  ;;  %v2136_v37 = vmul.f32 1.442695, %v2119_v27  ;;  %v2138_v6 = vmul.f32 1.442695, %v2120_v16  ;;  %v2129_v26 = vsub.f32 %v5059_v23, %v5068_v30 }
 0x6a1   : >> { %v2089_v9 = vpop.xlane.xlu1 %2088  ;;  %v5083_v41 = vmax.f32 %v5070_v33, %v2091_v59  ;;  %3898 = vpow2.f32 %v2140_v52 }
 0x6a2   : >> { %v5086_v42 = vmax.f32 %v5075_v34, %v2089_v9  ;;  %3639 = vmatpush3.bf16.msra.mxu1 %v1908_v62  ;;  %3900 = vpow2.f32 %v2136_v37 }
 0x6a3   : >> { %2649 = vst.msk [vmem:[#allocation6 + $0x50] sm:$0xff] %vm1831_vm5, %v5083_v41  ;;  %2193 = vperm.xlu1 %3895, %v5052_v17  }
 0x6a4   : >> { %2648 = vst.msk [vmem:[#allocation6 + $0x48] sm:$0xff] %vm1831_vm5, %v5086_v42  ;;  %2213 = vperm.xlu0 %3894, %v5086_v42   ;;  %v2095_v31 = vpop.xlane.xlu0 %2094 }
 0x6a5   : >> { %v2101_v59 = vpop.xlane.xlu1 %2100  ;;  %v5102_v9 = vmax.f32 %v5088_v43, %v2095_v31  ;;  %v2123_v31 = vsub.f32 %v5043_v2, %v5052_v17  ;;  %v2125_v2 = vsub.f32 %v5029_v58, %v5036_v60 }
 0x6a6   : >> { %v5105_v63 = vmax.f32 %v5093_v44, %v2101_v59 }
 0x6a7   : >> { %2651 = vst.msk [vmem:[#allocation6 + $0x60] sm:$0xff] %vm1831_vm5, %v5102_v9  ;;  %2203 = vperm.xlu1 %3895, %v5036_v60   ;;  %v2144_v17 = vmul.f32 1.442695, %v2123_v31  ;;  %v2124_v60 = vsub.f32 %v5039_v61, %v5049_v25 }
 0x6a8   : >> { %v2133_v3 = vsub.f32 %v5093_v44, %v5105_v63  ;;  %2654 = vst.msk [vmem:[#allocation6 + $0x78] sm:$0xff] %vm1831_vm5, %v5105_v63  ;;  %2223 = vperm.xlu0 %3894, %v5068_v30   ;;  %v2099_v62 = vpop.xlane.xlu0 %2098  ;;  %v2128_v30 = vsub.f32 %v5070_v33, %v5083_v41 }
 0x6a9   : >> { %v2097_v59 = vpop.xlane.xlu1 %2096  ;;  %v5122_v48 = vmax.f32 %v5107_v1, %v2099_v62  ;;  %v2122_v62 = vsub.f32 %v5025_v57, %v5033_v49  ;;  %3902 = vpow2.f32 %v2144_v17  ;;  %v2156_v57 = vmul.f32 1.442695, %v2129_v26 }
 0x6aa   : >> { %v2115_v29 = vmax.f32 %v2067_v54, %v2097_v59  ;;  %v2148_v59 = vmul.f32 1.442695, %v2125_v2  ;;  %v5140_v51 = vpop.eup %3896  ;;  %3904 = vpow2.f32 %v2138_v6  ;;  %v2127_v49 = vsub.f32 %v5075_v34, %v5086_v42 }
 0x6ab   : >> { %v2132_v53 = vsub.f32 %v5107_v1, %v5122_v48  ;;  %2653 = vst.msk [vmem:[#allocation6 + $0x70] sm:$0xff] %vm1831_vm5, %v5122_v48  ;;  %2208 = vperm.xlu1 %3895, %v5065_v32   ;;  %v2142_v58 = vmul.f32 1.442695, %v2122_v62  ;;  %v5148_v27 = vpop.eup %3898  ;;  %v2146_v23 = vmul.f32 1.442695, %v2124_v60  ;;  %v2126_v34 = vsub.f32 %v5054_v22, %v5065_v32 }
 0x6ac   : >> { %2652 = vst.msk [vmem:[#allocation6 + $0x68] sm:$0xff] %vm1831_vm5, %v2115_v29  ;;  %2233 = vperm.xlu0 %3894, %v2115_v29   ;;  %3906 = vpow2.f32 %v2148_v59  ;;  %v2152_v61 = vmul.f32 1.442695, %v2127_v49  ;;  %v2131_v25 = vsub.f32 %v2067_v54, %v2115_v29  ;;  %v5154_v52 = vpop.eup %3900  ;;  %v2154_v42 = vmul.f32 1.442695, %v2128_v30 }
 0x6ad   : >> { %3908 = vpow2.f32 %v2142_v58  ;;  %v2150_v29 = vmul.f32 1.442695, %v2126_v34  ;;  %v2130_v54 = vsub.f32 %v5088_v43, %v5102_v9 }
 0x6ae   : >> { %3910 = vpow2.f32 %v2156_v57  ;;  %v2160_v33 = vmul.f32 1.442695, %v2131_v25 }
 0x6af   : >> { %2218 = vperm.xlu1 %3895, %v5083_v41   ;;  %3912 = vpow2.f32 %v2146_v23  ;;  %v2158_v37 = vmul.f32 1.442695, %v2130_v54 }
 0x6b0   : >> { %2243 = vperm.xlu0 %3894, %v5105_v63   ;;  %3914 = vpow2.f32 %v2152_v61 }
 0x6b1   : >> { %3916 = vpow2.f32 %v2154_v42 }
 0x6b2   : >> { %3918 = vpow2.f32 %v2160_v33 }
 0x6b3   : >> { %2228 = vperm.xlu1 %3895, %v5102_v9   ;;  %v5156_v31 = vpop.eup %3902  ;;  %3920 = vpow2.f32 %v2150_v29 }
 0x6b4   : >> { %2408 = vperm.xlu0 %3894, %v5140_v51   ;;  %v5162_v41 = vpop.eup %3904  ;;  %3922 = vpow2.f32 %v2158_v37 }
 0x6b6   : >> { %v5164_v16 = vpop.eup %3906 }
 0x6b7   : >> { %2238 = vperm.xlu1 %3895, %v5122_v48   ;;  %v5170_v22 = vpop.eup %3908 }
 0x6b8   : >> { %2423 = vperm.xlu0 %3894, %v5148_v27   ;;  %v5172_v32 = vpop.eup %3910 }
 0x6b9   : >> { %v5176_v2 = vpop.eup %3912 }
 0x6ba   : >> { %v5178_v17 = vpop.eup %3914 }
 0x6bb   : >> { %2413 = vperm.xlu1 %3895, %v5154_v52   ;;  %v5182_v43 = vpop.eup %3916 }
 0x6bc   : >> { %2433 = vperm.xlu0 %3894, %v5156_v31   ;;  %v5184_v9 = vpop.eup %3918 }
 0x6bd   : >> { %v5188_v6 = vpop.eup %3920 }
 0x6be   : >> { %v5191_v62 = vpop.eup %3922 }
 0x6bf   : >> { %2418 = vperm.xlu1 %3895, %v5162_v41  }
 0x6c0   : >> { %2443 = vperm.xlu0 %3894, %v5164_v16  }
 0x6c3   : >> { %2428 = vperm.xlu1 %3895, %v5170_v22  }
 0x6c4   : >> { %2463 = vperm.xlu0 %3894, %v5172_v32  }
 0x6c7   : >> { %2438 = vperm.xlu1 %3895, %v5176_v2  }
 0x6c8   : >> { %2453 = vperm.xlu0 %3894, %v5178_v17  }
 0x6cb   : >> { %2458 = vperm.xlu1 %3895, %v5182_v43  }
 0x6cc   : >> { %2473 = vperm.xlu0 %3894, %v5184_v9  }
 0x6cf   : >> { %2448 = vperm.xlu1 %3895, %v5188_v6  }
 0x6d3   : >> { %2468 = vperm.xlu1 %3895, %v5191_v62  }
 0x70d   : >> { %v2179_v59 = vpop.permute.xlu1 %2178 }
 0x70e   : >> { %v2248_v26 = vsub.f32 %v4941_v19, %v2179_v59  ;;  %v2169_v58 = vpop.permute.xlu0 %2168 }
 0x70f   : >> { %v2246_v60 = vsub.f32 %v4944_v20, %v2169_v58 }
 0x710   : >> { %v2266_v57 = vmul.f32 1.442695, %v2248_v26 }
 0x711   : >> { %v2262_v49 = vmul.f32 1.442695, %v2246_v60  ;;  %v2184_v23 = vpop.permute.xlu1 %2183 }
 0x712   : >> { %3924 = vpow2.f32 %v2266_v57  ;;  %v2249_v30 = vsub.f32 %v4947_v36, %v2184_v23 }
 0x713   : >> { %3926 = vpow2.f32 %v2262_v49 }
 0x714   : >> { %v2268_v61 = vmul.f32 1.442695, %v2249_v30 }
 0x715   : >> { %v2174_v25 = vpop.permute.xlu1 %2173 }
 0x716   : >> { %3928 = vpow2.f32 %v2268_v61  ;;  %v2247_v34 = vsub.f32 %v4949_v39, %v2174_v25 }
 0x718   : >> { %v2264_v42 = vmul.f32 1.442695, %v2247_v34 }
 0x71a   : >> { %3930 = vpow2.f32 %v2264_v42  ;;  %v2199_v33 = vpop.permute.xlu1 %2198 }
 0x71b   : >> { %v2252_v19 = vsub.f32 %v4953_v0, %v2199_v33 }
 0x71c   : >> { %v3925_v29 = vpop.eup %3924 }
 0x71d   : >> { %v3927_v54 = vpop.eup %3926  ;;  %v2274_v20 = vmul.f32 1.442695, %v2252_v19  ;;  %2330 = vadd.xlane.f32.xlu0 %v3925_v29 }
 0x71e   : >> { %2326 = vadd.xlane.f32.xlu1 %v3927_v54  ;;  %v2189_v37 = vpop.permute.xlu1 %2188 }
 0x71f   : >> { %3932 = vpow2.f32 %v2274_v20  ;;  %v2250_v36 = vsub.f32 %v4955_v8, %v2189_v37 }
 0x720   : >> { %v3929_v59 = vpop.eup %3928 }
 0x721   : >> { %v2270_v26 = vmul.f32 1.442695, %v2250_v36  ;;  %v2503_v58 = vpack.c.bf16 %v3929_v59, %v3925_v29 }
 0x722   : >> { %2332 = vadd.xlane.f32.xlu1 %v3929_v59  ;;  %v2194_v60 = vpop.permute.xlu1 %2193 }
 0x723   : >> { %3934 = vpow2.f32 %v2270_v26  ;;  %v2251_v39 = vsub.f32 %v4961_v56, %v2194_v60  ;;  %v2214_v57 = vpop.permute.xlu0 %2213 }
 0x724   : >> { %v3931_v49 = vpop.eup %3930  ;;  %v2255_v30 = vsub.f32 %v4973_v12, %v2214_v57 }
 0x725   : >> { %v2272_v0 = vmul.f32 1.442695, %v2251_v39  ;;  %2328 = vadd.xlane.f32.xlu0 %v3931_v49  ;;  %v2502_v23 = vpack.c.bf16 %v3931_v49, %v3927_v54 }
 0x726   : >> { %v2204_v61 = vpop.permute.xlu1 %2203  ;;  %v2280_v33 = vmul.f32 1.442695, %v2255_v30 }
 0x727   : >> { %3936 = vpow2.f32 %v2272_v0  ;;  %v2253_v25 = vsub.f32 %v4958_v55, %v2204_v61  ;;  %v2224_v8 = vpop.permute.xlu0 %2223  ;;  %3640 = vmatprep.mubr.bf16.mxu1 %v2502_v23 }
 0x728   : >> { %3641 = vmatmul.mubr.bf16.vlgmr.msra.gmra.mrb[0].mxu1 %v2503_v58  ;;  %v2257_v19 = vsub.f32 %v4969_v11, %v2224_v8 }
 0x729   : >> { %v3933_v34 = vpop.eup %3932  ;;  %v2276_v42 = vmul.f32 1.442695, %v2253_v25 }
 0x72a   : >> { %2338 = vadd.xlane.f32.xlu0 %v3933_v34  ;;  %v2209_v56 = vpop.permute.xlu1 %2208  ;;  %v2284_v37 = vmul.f32 1.442695, %v2257_v19 }
 0x72b   : >> { %3938 = vpow2.f32 %v2276_v42  ;;  %v2254_v29 = vsub.f32 %v4967_v7, %v2209_v56  ;;  %v2234_v54 = vpop.permute.xlu0 %2233 }
 0x72c   : >> { %3940 = vpow2.f32 %v2280_v33  ;;  %v2259_v55 = vsub.f32 %v4985_v50, %v2234_v54 }
 0x72d   : >> { %v3935_v20 = vpop.eup %3934  ;;  %v2278_v12 = vmul.f32 1.442695, %v2254_v29 }
 0x72e   : >> { %2334 = vadd.xlane.f32.xlu0 %v3935_v20  ;;  %v2219_v36 = vpop.permute.xlu1 %2218  ;;  %v2288_v60 = vmul.f32 1.442695, %v2259_v55 }
 0x72f   : >> { %3942 = vpow2.f32 %v2278_v12  ;;  %v2256_v59 = vsub.f32 %v4965_v5, %v2219_v36  ;;  %v2244_v26 = vpop.permute.xlu0 %2243  ;;  %v2162_v12 = vmul.f32 1.442695, %v2132_v53 }
 0x730   : >> { %3944 = vpow2.f32 %v2284_v37  ;;  %v2261_v39 = vsub.f32 %v4981_v38, %v2244_v26  ;;  %v2164_v37 = vmul.f32 1.442695, %v2133_v3 }
 0x731   : >> { %v3937_v58 = vpop.eup %3936  ;;  %v2282_v11 = vmul.f32 1.442695, %v2256_v59 }
 0x732   : >> { %v2229_v7 = vpop.permute.xlu1 %2228  ;;  %v2504_v57 = vpack.c.bf16 %v3937_v58, %v3935_v20  ;;  %v2292_v23 = vmul.f32 1.442695, %v2261_v39 }
 0x733   : >> { %3946 = vpow2.f32 %v2282_v11  ;;  %v2258_v49 = vsub.f32 %v4979_v13, %v2229_v7  ;;  %v5222_v59 = vpop.permute.xlu0 %2408 }
 0x734   : >> { %3644 = vmatprep.mubr.bf16.mxu1 %v2504_v57  ;;  %3948 = vpow2.f32 %v2288_v60  ;;  %v2296_v57 = vld [vmem:[#allocation7 + $0x10] sm:$0xff] }
 0x735   : >> { %v3939_v0 = vpop.eup %3938  ;;  %v2286_v50 = vmul.f32 1.442695, %v2258_v49 }
 0x736   : >> { %2340 = vadd.xlane.f32.xlu1 %v3939_v0  ;;  %v2239_v30 = vpop.permute.xlu1 %2238  ;;  %v2505_v5 = vpack.c.bf16 %v3939_v0, %v3933_v34  ;;  %v3941_v25 = vpop.eup %3940  ;;  %v2294_v0 = vld [vmem:[#allocation7] sm:$0xff] }
 0x737   : >> { %3950 = vpow2.f32 %v2286_v50  ;;  %v2260_v61 = vsub.f32 %v4977_v10, %v2239_v30  ;;  %v5226_v48 = vpop.permute.xlu0 %2423  ;;  %v2312_v50 = vmul.f32 %v5162_v41, %v2296_v57  ;;  %v2310_v30 = vmul.f32 %v5140_v51, %v2294_v0  ;;  %v2300_v51 = vld [vmem:[#allocation7 + $0x30] sm:$0xff]  ;;  %v2299_v0 = vld [vmem:[#allocation7 + $0x28] sm:$0xff] }
 0x738   : >> { %3645 = vmatmul.mubr.bf16.gmra.mrb[4].mxu1 %v2505_v5  ;;  %3952 = vpow2.f32 %v2292_v23 }
 0x739   : >> { %v3943_v8 = vpop.eup %3942  ;;  %v2290_v38 = vmul.f32 1.442695, %v2260_v61 }
 0x73a   : >> { %2336 = vadd.xlane.f32.xlu1 %v3937_v58  ;;  %v2506_v42 = vpack.c.bf16 %v3941_v25, %v3943_v8  ;;  %v3945_v13 = vpop.eup %3944  ;;  %v5224_v26 = vpop.permute.xlu1 %2413 }
 0x73b   : >> { %3954 = vpow2.f32 %v2290_v38  ;;  %v5230_v53 = vpop.permute.xlu0 %2433 }
 0x73c   : >> { %3648 = vmatprep.mubr.bf16.mxu1 %v2506_v42  ;;  %3956 = vpow2.f32 %v2162_v12  ;;  %v2295_v42 = vld [vmem:[#allocation7 + $0x8] sm:$0xff] }
 0x73d   : >> { %v3947_v33 = vpop.eup %3946  ;;  %3958 = vpow2.f32 %v2164_v37 }
 0x73e   : >> { %2348 = vadd.xlane.f32.xlu1 %v3945_v13  ;;  %2346 = vadd.xlane.f32.xlu0 %v3947_v33  ;;  %v2507_v19 = vpack.c.bf16 %v3945_v13, %v3947_v33  ;;  %v3949_v56 = vpop.eup %3948  ;;  %v5228_v1 = vpop.permute.xlu1 %2418 }
 0x73f   : >> { %v5234_v63 = vpop.permute.xlu0 %2443 }
 0x740   : >> { %3649 = vmatmul.mubr.bf16.gmra.mrb[8].mxu1 %v2507_v19  ;;  %v2311_v19 = vmul.f32 %v5154_v52, %v2295_v42  ;;  %v2301_v52 = vld [vmem:[#allocation7 + $0x38] sm:$0xff]  ;;  %v2303_v42 = vld [vmem:[#allocation7 + $0x48] sm:$0xff] }
 0x741   : >> { %v3951_v34 = vpop.eup %3950  ;;  %v2317_v37 = vmul.f32 %v5164_v16, %v2301_v52  ;;  %v2302_v16 = vld [vmem:[#allocation7 + $0x40] sm:$0xff] }
 0x742   : >> { %2344 = vadd.xlane.f32.xlu1 %v3941_v25  ;;  %2342 = vadd.xlane.f32.xlu0 %v3943_v8  ;;  %v2508_v10 = vpack.c.bf16 %v3949_v56, %v3951_v34  ;;  %v3953_v29 = vpop.eup %3952  ;;  %v5232_v44 = vpop.permute.xlu1 %2428  ;;  %v2297_v25 = vld [vmem:[#allocation7 + $0x18] sm:$0xff] }
 0x743   : >> { %v5238_v58 = vpop.permute.xlu0 %2463  ;;  %v2313_v38 = vmul.f32 %v5148_v27, %v2297_v25 }
 0x744   : >> { %3652 = vmatprep.mubr.bf16.mxu1 %v2508_v10 }
 0x745   : >> { %v3955_v54 = vpop.eup %3954 }
 0x746   : >> { %2356 = vadd.xlane.f32.xlu1 %v3953_v29  ;;  %2354 = vadd.xlane.f32.xlu0 %v3955_v54  ;;  %v2509_v20 = vpack.c.bf16 %v3953_v29, %v3955_v54  ;;  %v5216_v55 = vpop.eup %3956  ;;  %v5236_v3 = vpop.permute.xlu1 %2438  ;;  %v2298_v29 = vld [vmem:[#allocation7 + $0x20] sm:$0xff] }
 0x747   : >> { %v5219_v36 = vpop.eup %3958  ;;  %v5242_v60 = vpop.permute.xlu0 %2453  ;;  %v2314_v27 = vmul.f32 %v5170_v22, %v2298_v29 }
 0x748   : >> { %3653 = vmatmul.mubr.bf16.gmra.mrb[12].mxu1 %v2509_v20 }
 0x74a   : >> { %2352 = vadd.xlane.f32.xlu1 %v3949_v56  ;;  %2350 = vadd.xlane.f32.xlu0 %v3951_v34  ;;  %v5240_v11 = vpop.permute.xlu1 %2458  ;;  %v2316_v34 = vmul.f32 %v5176_v2, %v2300_v51  ;;  %v2315_v2 = vmul.f32 %v5156_v31, %v2299_v0  ;;  %v2318_v31 = vmul.f32 %v5188_v6, %v2302_v16  ;;  %v2308_v51 = vld [vmem:[#allocation7 + $0x70] sm:$0xff]  ;;  %v2307_v6 = vld [vmem:[#allocation7 + $0x68] sm:$0xff] }
 0x74b   : >> { %v5246_v7 = vpop.permute.xlu0 %2473 }
 0x74e   : >> { %v5244_v39 = vpop.permute.xlu1 %2448 }
 0x752   : >> { %v5248_v49 = vpop.permute.xlu1 %2468 }
 0x75b   : >> { %2478 = vperm.xlu1 %3895, %v5216_v55  }
 0x760   : >> { %2483 = vperm.xlu0 %3894, %v5219_v36  }
 0x7aa   : >> { %v2331_v23 = vpop.xlane.xlu0 %2330 }
 0x7ab   : >> { %v2360_v5 = vadd.f32 %v2331_v23, %v2312_v50  ;;  %v2327_v61 = vpop.xlane.xlu1 %2326 }
 0x7ac   : >> { %v2358_v8 = vadd.f32 %v2327_v61, %v2310_v30  ;;  %v2304_v30 = vld [vmem:[#allocation7 + $0x50] sm:$0xff] }
 0x7ad   : >> { %2376 = vst.msk [vmem:[#allocation7 + $0x10] sm:$0xff] %vm1831_vm5, %v2360_v5  ;;  %v2305_v5 = vld [vmem:[#allocation7 + $0x58] sm:$0xff]  ;;  %v2320_v22 = vmul.f32 %v5182_v43, %v2304_v30  ;;  %v2391_v30 = vld [vmem:[#allocation8 + $0x8] sm:$0xff] }
 0x7ae   : >> { %2374 = vst.msk [vmem:[#allocation7] sm:$0xff] %vm1831_vm5, %v2358_v8  ;;  %v2321_v25 = vmul.f32 %v5172_v32, %v2305_v5  ;;  %v2309_v43 = vld [vmem:[#allocation7 + $0x78] sm:$0xff] }
 0x7af   : >> { %v2333_v13 = vpop.xlane.xlu1 %2332  ;;  %v2325_v29 = vmul.f32 %v5219_v36, %v2309_v43  ;;  %v2392_v36 = vld [vmem:[#allocation8 + $0x10] sm:$0xff] }
 0x7b0   : >> { %v2361_v33 = vadd.f32 %v2333_v13, %v2313_v38  ;;  %v2488_v5 = vmul.f32 %v5228_v1, %v2392_v36  ;;  %v2394_v1 = vld [vmem:[#allocation8 + $0x20] sm:$0xff] }
 0x7b2   : >> { %2377 = vst.msk [vmem:[#allocation7 + $0x18] sm:$0xff] %vm1831_vm5, %v2361_v33  ;;  %v2329_v41 = vpop.xlane.xlu0 %2328 }
 0x7b3   : >> { %v2359_v56 = vadd.f32 %v2329_v41, %v2311_v19  ;;  %v2319_v19 = vmul.f32 %v5178_v17, %v2303_v42 }
 0x7b5   : >> { %2375 = vst.msk [vmem:[#allocation7 + $0x8] sm:$0xff] %vm1831_vm5, %v2359_v56 }
 0x7b7   : >> { %v2339_v10 = vpop.xlane.xlu0 %2338 }
 0x7b8   : >> { %v2364_v54 = vadd.f32 %v2339_v10, %v2316_v34  ;;  %v2324_v10 = vmul.f32 %v5216_v55, %v2308_v51 }
 0x7ba   : >> { %2380 = vst.msk [vmem:[#allocation7 + $0x30] sm:$0xff] %vm1831_vm5, %v2364_v54 }
 0x7bb   : >> { %v2335_v20 = vpop.xlane.xlu0 %2334 }
 0x7bc   : >> { %v2362_v12 = vadd.f32 %v2335_v20, %v2314_v27  ;;  %v2306_v20 = vld [vmem:[#allocation7 + $0x60] sm:$0xff] }
 0x7bd   : >> { %v2322_v52 = vmul.f32 %v5191_v62, %v2306_v20 }
 0x7be   : >> { %2378 = vst.msk [vmem:[#allocation7 + $0x20] sm:$0xff] %vm1831_vm5, %v2362_v12 }
 0x7c3   : >> { %v2341_v57 = vpop.xlane.xlu1 %2340 }
 0x7c4   : >> { %v2365_v50 = vadd.f32 %v2341_v57, %v2317_v37  ;;  %v2323_v37 = vmul.f32 %v5184_v9, %v2307_v6 }
 0x7c6   : >> { %2381 = vst.msk [vmem:[#allocation7 + $0x38] sm:$0xff] %vm1831_vm5, %v2365_v50 }
 0x7c7   : >> { %v2337_v23 = vpop.xlane.xlu1 %2336 }
 0x7c8   : >> { %v2363_v61 = vadd.f32 %v2337_v23, %v2315_v2  ;;  %v2390_v2 = vld [vmem:[#allocation8] sm:$0xff]  ;;  %v2393_v23 = vld [vmem:[#allocation8 + $0x18] sm:$0xff] }
 0x7c9   : >> { %v2489_v62 = vmul.f32 %v5226_v48, %v2393_v23  ;;  %v2397_v48 = vld [vmem:[#allocation8 + $0x38] sm:$0xff] }
 0x7ca   : >> { %2379 = vst.msk [vmem:[#allocation7 + $0x28] sm:$0xff] %vm1831_vm5, %v2363_v61  ;;  %v2486_v61 = vmul.f32 %v5222_v59, %v2390_v2  ;;  %v2396_v59 = vld [vmem:[#allocation8 + $0x30] sm:$0xff] }
 0x7cb   : >> { %v2347_v8 = vpop.xlane.xlu0 %2346  ;;  %v2349_v38 = vpop.xlane.xlu1 %2348  ;;  %v2404_v2 = vld [vmem:[#allocation8 + $0x70] sm:$0xff] }
 0x7cc   : >> { %v2368_v13 = vadd.f32 %v2347_v8, %v2320_v22  ;;  %v2369_v33 = vadd.f32 %v2349_v38, %v2321_v25  ;;  %v2487_v8 = vmul.f32 %v5224_v26, %v2391_v30  ;;  %v2490_v26 = vmul.f32 %v5232_v44, %v2394_v1  ;;  %v2401_v44 = vld [vmem:[#allocation8 + $0x58] sm:$0xff]  ;;  %v2402_v30 = vld [vmem:[#allocation8 + $0x60] sm:$0xff] }
 0x7cd   : > { %v4053_v1 = vmov (%p1882_p8), 0  }
 0x7ce   : >> { %2384 = vst.msk [vmem:[#allocation7 + $0x50] sm:$0xff] %vm1831_vm5, %v2368_v13  ;;  %2385 = vst.msk [vmem:[#allocation7 + $0x58] sm:$0xff] %vm1831_vm5, %v2369_v33  ;;  %3961 = vset.pattern.permute.xlu1 (%p1882_p8), %v4053_v1  ;;  %3960 = vset.pattern.permute.xlu0 (%p1882_p8), %v4053_v1 }
 0x7cf   : >> { %v2343_v41 = vpop.xlane.xlu0 %2342  ;;  %v2345_v56 = vpop.xlane.xlu1 %2344 }
 0x7d0   : >> { %v2366_v34 = vadd.f32 %v2343_v41, %v2318_v31  ;;  %v2367_v32 = vadd.f32 %v2345_v56, %v2319_v19  ;;  %v2395_v31 = vld [vmem:[#allocation8 + $0x28] sm:$0xff]  ;;  %v2492_v19 = vmul.f32 %v5236_v3, %v2396_v59  ;;  %v2493_v56 = vmul.f32 %v5234_v63, %v2397_v48  ;;  %v2398_v3 = vld [vmem:[#allocation8 + $0x40] sm:$0xff] }
 0x7d1   : >> { %v2399_v63 = vld [vmem:[#allocation8 + $0x48] sm:$0xff] }
 0x7d2   : >> { %2382 = vst.msk [vmem:[#allocation7 + $0x40] sm:$0xff] %vm1831_vm5, %v2366_v34  ;;  %2383 = vst.msk [vmem:[#allocation7 + $0x48] sm:$0xff] %vm1831_vm5, %v2367_v32  ;;  %v2491_v34 = vmul.f32 %v5230_v53, %v2395_v31  ;;  %v2494_v53 = vmul.f32 %v5244_v39, %v2398_v3  ;;  %v2405_v39 = vld [vmem:[#allocation8 + $0x78] sm:$0xff]  ;;  %v2672_v48 = vld [vmem:[#allocation7 + $0x8] sm:$0xff] (%p1882_p8) }
 0x7d3   : >> { %v2355_v54 = vpop.xlane.xlu0 %2354  ;;  %v2357_v27 = vpop.xlane.xlu1 %2356  ;;  %v2674_v31 = vld [vmem:[#allocation7 + $0x18] sm:$0xff] (%p1882_p8) }
 0x7d4   : >> { %v2372_v12 = vadd.f32 %v2355_v54, %v2324_v10  ;;  %v2373_v17 = vadd.f32 %v2357_v27, %v2325_v29  ;;  %v2400_v27 = vld [vmem:[#allocation8 + $0x50] sm:$0xff] }
 0x7d5   : >> { %v2496_v6 = vmul.f32 %v5240_v11, %v2400_v27  ;;  %v3964_v27 = vld [vmem:[%s5411_s10 + $0x10] sm:$0xff] (%p1882_p8)  }
 0x7d6   : >> { %2388 = vst.msk [vmem:[#allocation7 + $0x70] sm:$0xff] %vm1831_vm5, %v2372_v12  ;;  %2389 = vst.msk [vmem:[#allocation7 + $0x78] sm:$0xff] %vm1831_vm5, %v2373_v17  ;;  %v2497_v17 = vmul.f32 %v5238_v58, %v2401_v44 }
 0x7d7   : >> { %v2351_v57 = vpop.xlane.xlu0 %2350  ;;  %v2353_v0 = vpop.xlane.xlu1 %2352 }
 0x7d8   : >> { %v2370_v50 = vadd.f32 %v2351_v57, %v2322_v52  ;;  %v2371_v55 = vadd.f32 %v2353_v0, %v2323_v37  ;;  %v2495_v57 = vmul.f32 %v5242_v60, %v2399_v63 }
 0x7d9   : > { %v2680_v59 = vld [vmem:[#allocation7 + $0x48] sm:$0xff] (%p1882_p8) }
 0x7da   : >> { %2386 = vst.msk [vmem:[#allocation7 + $0x60] sm:$0xff] %vm1831_vm5, %v2370_v50  ;;  %2387 = vst.msk [vmem:[#allocation7 + $0x68] sm:$0xff] %vm1831_vm5, %v2371_v55 }
 0x7db   : >> { %v2479_v23 = vpop.permute.xlu1 %2478 }
 0x7dc   : >> { %v2500_v60 = vmul.f32 %v2479_v23, %v2404_v2 }
 0x7df   : >> { %v2484_v58 = vpop.permute.xlu0 %2483 }
 0x7e1   : > { %v2683_v44 = vld [vmem:[#allocation7 + $0x60] sm:$0xff] (%p1882_p8) }
 0x7fb   : >> { %v3642_v22 = vpop.f32.mrb[0].mxu1 }
 0x7fc   : >> { %v2609_v9 = vadd.f32 %v3642_v22, %v2488_v5  ;;  %v2544_v25 = vpop.f32.mrb[1].mxu1  ;;  %v2403_v5 = vld [vmem:[#allocation8 + $0x68] sm:$0xff] }
 0x7fd   : >> { %v2607_v38 = vadd.f32 %v2544_v25, %v2486_v61  ;;  %v3643_v16 = vpop.f32.mrb[2].mxu1  ;;  %v2498_v61 = vmul.f32 %v5248_v49, %v2402_v30  ;;  %v2671_v49 = vld [vmem:[#allocation7] sm:$0xff] (%p1882_p8) }
 0x7fe   : >> { %2625 = vst.msk [vmem:[#allocation8 + $0x10] sm:$0xff] %vm1701_vm6, %v2609_v9  ;;  %v2610_v42 = vadd.f32 %v3643_v16, %v2489_v62  ;;  %v2547_v13 = vpop.f32.mrb[3].mxu1  ;;  %v2501_v62 = vmul.f32 %v2484_v58, %v2405_v39 }
 0x7ff   : >> { %2623 = vst.msk [vmem:[#allocation8] sm:$0xff] %vm1701_vm6, %v2607_v38  ;;  %v2608_v33 = vadd.f32 %v2547_v13, %v2487_v8  ;;  %v2499_v8 = vmul.f32 %v5246_v7, %v2403_v5  ;;  %v2679_v7 = vld [vmem:[#allocation7 + $0x40] sm:$0xff] (%p1882_p8) }
 0x800   : >> { %2626 = vst.msk [vmem:[#allocation8 + $0x18] sm:$0xff] %vm1701_vm6, %v2610_v42  ;;  %3966 = vrcp.f32 (%p1882_p8), %v2679_v7 }
 0x801   : >> { %2624 = vst.msk [vmem:[#allocation8 + $0x8] sm:$0xff] %vm1701_vm6, %v2608_v33  ;;  %3968 = vrcp.f32 (%p1882_p8), %v2671_v49 }
 0x802   : > { %3970 = vrcp.f32 (%p1882_p8), %v2680_v59 }
 0x803   : > { %3972 = vrcp.f32 (%p1882_p8), %v2672_v48 }
 0x804   : > { %3974 = vrcp.f32 (%p1882_p8), %v2674_v31 }
 0x80b   : >> { %v3646_v41 = vpop.f32.mrb[4].mxu1 }
 0x80c   : >> { %v2613_v51 = vadd.f32 %v3646_v41, %v2492_v19  ;;  %v2560_v43 = vpop.f32.mrb[5].mxu1  ;;  %v2673_v19 = vld [vmem:[#allocation7 + $0x10] sm:$0xff] (%p1882_p8)  ;;  %v2682_v41 = vld [vmem:[#allocation7 + $0x58] sm:$0xff] (%p1882_p8) }
 0x80d   : >> { %v2611_v32 = vadd.f32 %v2560_v43, %v2490_v26  ;;  %v3647_v10 = vpop.f32.mrb[6].mxu1  ;;  %v3962_v26 = vld [vmem:[%s5411_s10] sm:$0xff] (%p1882_p8)   ;;  %3976 = vrcp.f32 (%p1882_p8), %v2673_v19  ;;  %v3963_v43 = vld [vmem:[%s5411_s10 + $0x8] sm:$0xff] (%p1882_p8)  }
 0x80e   : >> { %2629 = vst.msk [vmem:[#allocation8 + $0x30] sm:$0xff] %vm1701_vm6, %v2613_v51  ;;  %v2614_v29 = vadd.f32 %v3647_v10, %v2493_v56  ;;  %v2563_v54 = vpop.f32.mrb[7].mxu1  ;;  %3656 = vmatprep.subr.bf16.mxu0 (%p1882_p8), %v3962_v26  ;;  %3808 = vmatprep.subr.bf16.mxu1 (%p1882_p8), %v3962_v26  ;;  %v2681_v56 = vld [vmem:[#allocation7 + $0x50] sm:$0xff] (%p1882_p8)  ;;  %v3967_v51 = vpop.eup (%p1882_p8), %3966  ;;  %3978 = vrcp.f32 (%p1882_p8), %v2682_v41 }
 0x80f   : >> { %2627 = vst.msk [vmem:[#allocation8 + $0x20] sm:$0xff] %vm1701_vm6, %v2611_v32  ;;  %v2612_v20 = vadd.f32 %v2563_v54, %v2491_v34  ;;  %3657 = vmatpush3.bf16.msra.mxu0 (%p1882_p8), %v3962_v26  ;;  %3812 = vmatpush3.bf16.msra.mxu1 (%p1882_p8), %v3962_v26  ;;  %v3969_v34 = vpop.eup (%p1882_p8), %3968  ;;  %3980 = vrcp.f32 (%p1882_p8), %v2681_v56  ;;  %v2676_v32 = vld [vmem:[#allocation7 + $0x28] sm:$0xff] (%p1882_p8) }
 0x810   : >> { %2630 = vst.msk [vmem:[#allocation8 + $0x38] sm:$0xff] %vm1701_vm6, %v2614_v29  ;;  %2745 = vperm.xlu1 (%p1882_p8), %3961, %v3967_v51   ;;  %v3971_v10 = vpop.eup (%p1882_p8), %3970  ;;  %2705 = vperm.xlu0 (%p1882_p8), %3960, %v3969_v34   ;;  %v2675_v29 = vld [vmem:[#allocation7 + $0x20] sm:$0xff] (%p1882_p8)  ;;  %3982 = vrcp.f32 (%p1882_p8), %v2676_v32 }
 0x811   : >> { %2628 = vst.msk [vmem:[#allocation8 + $0x28] sm:$0xff] %vm1701_vm6, %v2612_v20  ;;  %3658 = vmatprep.subr.bf16.mxu0 (%p1882_p8), %v3963_v43  ;;  %v3973_v54 = vpop.eup (%p1882_p8), %3972  ;;  %3809 = vmatprep.subr.bf16.mxu1 (%p1882_p8), %v3963_v43  ;;  %3984 = vrcp.f32 (%p1882_p8), %v2675_v29  ;;  %v2684_v20 = vld [vmem:[#allocation7 + $0x68] sm:$0xff] (%p1882_p8) }
 0x812   : > { %v3975_v3 = vpop.eup (%p1882_p8), %3974  ;;  %3986 = vrcp.f32 (%p1882_p8), %v2684_v20 }
 0x813   : >> { %v3650_v12 = vpop.f32.mrb[8].mxu1  ;;  %3659 = vmatpush3.bf16.msra.mxu0 (%p1882_p8), %v3963_v43  ;;  %3813 = vmatpush3.bf16.msra.mxu1 (%p1882_p8), %v3963_v43  ;;  %3988 = vrcp.f32 (%p1882_p8), %v2683_v44 }
 0x814   : >> { %v2617_v52 = vadd.f32 %v3650_v12, %v2496_v6  ;;  %v2576_v37 = vpop.f32.mrb[9].mxu1  ;;  %2750 = vperm.xlu1 (%p1882_p8), %3961, %v3971_v10   ;;  %2710 = vperm.xlu0 (%p1882_p8), %3960, %v3973_v54   ;;  %v3965_v6 = vld [vmem:[%s5411_s10 + $0x18] sm:$0xff] (%p1882_p8)  }
 0x815   : >> { %v2615_v0 = vadd.f32 %v2576_v37, %v2494_v53  ;;  %v3651_v50 = vpop.f32.mrb[10].mxu1  ;;  %3660 = vmatprep.subr.bf16.mxu0 (%p1882_p8), %v3964_v27  ;;  %3810 = vmatprep.subr.bf16.mxu1 (%p1882_p8), %v3964_v27  ;;  %v2678_v53 = vld [vmem:[#allocation7 + $0x38] sm:$0xff] (%p1882_p8) }
 0x816   : >> { %2633 = vst.msk [vmem:[#allocation8 + $0x50] sm:$0xff] %vm1701_vm6, %v2617_v52  ;;  %v2618_v55 = vadd.f32 %v3651_v50, %v2497_v17  ;;  %v2579_v36 = vpop.f32.mrb[11].mxu1  ;;  %v2677_v17 = vld [vmem:[#allocation7 + $0x30] sm:$0xff] (%p1882_p8)  ;;  %3990 = vrcp.f32 (%p1882_p8), %v2678_v53  ;;  %v2686_v37 = vld [vmem:[#allocation7 + $0x78] sm:$0xff] (%p1882_p8)  ;;  %v2659_v32 = vld [vmem:[#allocation8 + $0x20] sm:$0xff] (%p1882_p8) }
 0x817   : >> { %2631 = vst.msk [vmem:[#allocation8 + $0x40] sm:$0xff] %vm1701_vm6, %v2615_v0  ;;  %v2616_v11 = vadd.f32 %v2579_v36, %v2495_v57  ;;  %v3977_v63 = vpop.eup (%p1882_p8), %3976  ;;  %3661 = vmatpush3.bf16.msra.mxu0 (%p1882_p8), %v3964_v27  ;;  %3814 = vmatpush3.bf16.msra.mxu1 (%p1882_p8), %v3964_v27  ;;  %3992 = vrcp.f32 (%p1882_p8), %v2677_v17  ;;  %v2685_v0 = vld [vmem:[#allocation7 + $0x70] sm:$0xff] (%p1882_p8) }
 0x818   : >> { %2634 = vst.msk [vmem:[#allocation8 + $0x58] sm:$0xff] %vm1701_vm6, %v2618_v55  ;;  %2720 = vperm.xlu1 (%p1882_p8), %3961, %v3975_v3   ;;  %v3979_v12 = vpop.eup (%p1882_p8), %3978  ;;  %2715 = vperm.xlu0 (%p1882_p8), %3960, %v3977_v63   ;;  %3994 = vrcp.f32 (%p1882_p8), %v2686_v37  ;;  %v2660_v34 = vld [vmem:[#allocation8 + $0x28] sm:$0xff] (%p1882_p8)  ;;  %v2661_v37 = vld [vmem:[#allocation8 + $0x30] sm:$0xff] (%p1882_p8) }
 0x819   : >> { %2632 = vst.msk [vmem:[#allocation8 + $0x48] sm:$0xff] %vm1701_vm6, %v2616_v11  ;;  %3662 = vmatprep.subr.bf16.mxu0 (%p1882_p8), %v3965_v6  ;;  %v3981_v52 = vpop.eup (%p1882_p8), %3980  ;;  %3811 = vmatprep.subr.bf16.mxu1 (%p1882_p8), %v3965_v6  ;;  %3996 = vrcp.f32 (%p1882_p8), %v2685_v0 }
 0x81a   : > { %v3983_v57 = vpop.eup (%p1882_p8), %3982 }
 0x81b   : >> { %v3654_v22 = vpop.f32.mrb[12].mxu1  ;;  %1884 = sbr.rel (!%p1882_p8) target bundleno = 1253 (0x4e5), region = 112  ;;  %3663 = vmatpush3.bf16.msra.mxu0 (%p1882_p8), %v3965_v6  ;;  %3815 = vmatpush3.bf16.msra.mxu1 (%p1882_p8), %v3965_v6  ;;  %v3985_v50 = vpop.eup (%p1882_p8), %3984 }
 0x81c   : >> { %v2621_v9 = vadd.f32 %v3654_v22, %v2500_v60  ;;  %v2592_v25 = vpop.f32.mrb[13].mxu1  ;;  %2760 = vperm.xlu1 (%p1882_p8), %3961, %v3979_v12   ;;  %2755 = vperm.xlu0 (%p1882_p8), %3960, %v3981_v52   ;;  %v3987_v55 = vpop.eup (%p1882_p8), %3986  ;;  %v2656_v22 = vld [vmem:[#allocation8 + $0x8] sm:$0xff] (%p1882_p8)  ;;  %v2662_v52 = vld [vmem:[#allocation8 + $0x38] sm:$0xff] (%p1882_p8) }
 0x81d   : >> { %v2619_v38 = vadd.f32 %v2592_v25, %v2498_v61  ;;  %v3655_v16 = vpop.f32.mrb[14].mxu1  ;;  %v3989_v36 = vpop.eup (%p1882_p8), %3988  ;;  %v2655_v61 = vld [vmem:[#allocation8] sm:$0xff] (%p1882_p8)  ;;  %v2665_v19 = vld [vmem:[#allocation8 + $0x50] sm:$0xff] (%p1882_p8) }
 0x81e   : >> { %2637 = vst.msk [vmem:[#allocation8 + $0x70] sm:$0xff] %vm1701_vm6, %v2621_v9  ;;  %v2622_v42 = vadd.f32 %v3655_v16, %v2501_v62  ;;  %v2595_v13 = vpop.f32.mrb[15].mxu1  ;;  %v2663_v5 = vld [vmem:[#allocation8 + $0x40] sm:$0xff] (%p1882_p8) }
 0x81f   : >> { %2635 = vst.msk [vmem:[#allocation8 + $0x60] sm:$0xff] %vm1701_vm6, %v2619_v38  ;;  %v2620_v33 = vadd.f32 %v2595_v13, %v2499_v8  ;;  %v2657_v13 = vld [vmem:[#allocation8 + $0x10] sm:$0xff] (%p1882_p8)  ;;  %v2666_v31 = vld [vmem:[#allocation8 + $0x58] sm:$0xff] (%p1882_p8) }
 0x820   : >> { %2638 = vst.msk [vmem:[#allocation8 + $0x78] sm:$0xff] %vm1701_vm6, %v2622_v42  ;;  %2730 = vperm.xlu1 (%p1882_p8), %3961, %v3983_v57   ;;  %2725 = vperm.xlu0 (%p1882_p8), %3960, %v3985_v50   ;;  %v3991_v2 = vpop.eup (%p1882_p8), %3990  ;;  %v2664_v60 = vld [vmem:[#allocation8 + $0x48] sm:$0xff] (%p1882_p8)  ;;  %v2658_v42 = vld [vmem:[#allocation8 + $0x18] sm:$0xff] (%p1882_p8) }
 0x821   : >> { %2636 = vst.msk [vmem:[#allocation8 + $0x68] sm:$0xff] %vm1701_vm6, %v2620_v33  ;;  %v3993_v23 = vpop.eup (%p1882_p8), %3992 }
 0x822   : > { %v3995_v11 = vpop.eup %3994 }
 0x823   : > { %v3997_v30 = vpop.eup %3996 }
 0x824   : > { %2770 = vperm.xlu1 %3961, %v3987_v55   ;;  %2765 = vperm.xlu0 %3960, %v3989_v36  }
 0x826   : > { %v2667_v44 = vld [vmem:[#allocation8 + $0x60] sm:$0xff] }
 0x828   : > { %2740 = vperm.xlu1 %3961, %v3991_v2   ;;  %2735 = vperm.xlu0 %3960, %v3993_v23   ;;  %v2668_v3 = vld [vmem:[#allocation8 + $0x68] sm:$0xff]  ;;  %v2670_v2 = vld [vmem:[#allocation8 + $0x78] sm:$0xff]  ;;  %v2669_v23 = vld [vmem:[#allocation8 + $0x70] sm:$0xff] }
 0x82c   : > { %2780 = vperm.xlu1 %3961, %v3995_v11   ;;  %2775 = vperm.xlu0 %3960, %v3997_v30  }
 0x88f   : > { %v2746_v39 = vpop.permute.xlu1 %2745  ;;  %v2706_v58 = vpop.permute.xlu0 %2705 }
 0x890   : > { %v2791_v9 = vmul.f32 %v2746_v39, %v2663_v5  ;;  %v2783_v38 = vmul.f32 %v2706_v58, %v2655_v61  ;;  %v3194_v61 = vld [vmem:[%s5412_s11] ss:$0 sm:$0xff] }
 0x893   : > { %v2751_v62 = vpop.permute.xlu1 %2750  ;;  %v2711_v8 = vpop.permute.xlu0 %2710 }
 0x894   : > { %v2792_v25 = vmul.f32 %v2751_v62, %v2664_v60  ;;  %v2784_v16 = vmul.f32 %v2711_v8, %v2656_v22 }
 0x896   : > { %v2803_v33 = vpack.c.bf16 %v2792_v25, %v2791_v9  ;;  %v2799_v49 = vpack.c.bf16 %v2784_v16, %v2783_v38 }
 0x897   : > { %v2721_v7 = vpop.permute.xlu1 %2720  ;;  %v2716_v1 = vpop.permute.xlu0 %2715 }
 0x898   : > { %v2786_v59 = vmul.f32 %v2721_v7, %v2658_v42  ;;  %3672 = vmatprep.mubr.msk.bf16.mxu1 %vm1701_vm6, %v2803_v33  ;;  %v2785_v48 = vmul.f32 %v2716_v1, %v2657_v13  ;;  %3664 = vmatprep.mubr.msk.bf16.mxu0 %vm1701_vm6, %v2799_v49 }
 0x89a   : > { %v2800_v26 = vpack.c.bf16 %v2786_v59, %v2785_v48 }
 0x89b   : > { %v2761_v41 = vpop.permute.xlu1 %2760  ;;  %v2756_v51 = vpop.permute.xlu0 %2755 }
 0x89c   : > { %v2794_v56 = vmul.f32 %v2761_v41, %v2666_v31  ;;  %v2793_v43 = vmul.f32 %v2756_v51, %v2665_v19  ;;  %3665 = vmatmul.mubr.msk.bf16.vlgmr.msra.gmra.mrb[0].mxu0 %vm1701_vm6, %v2800_v26 }
 0x89e   : > { %v2804_v10 = vpack.c.bf16 %v2794_v56, %v2793_v43 }
 0x89f   : > { %v2731_v29 = vpop.permute.xlu1 %2730  ;;  %v2726_v27 = vpop.permute.xlu0 %2725 }
 0x8a0   : > { %v2788_v54 = vmul.f32 %v2731_v29, %v2660_v34  ;;  %v2787_v20 = vmul.f32 %v2726_v27, %v2659_v32  ;;  %3673 = vmatmul.mubr.msk.bf16.vlgmr.msra.gmra.mrb[0].mxu1 %vm1701_vm6, %v2804_v10 }
 0x8a2   : > { %v2801_v63 = vpack.c.bf16 %v2788_v54, %v2787_v20 }
 0x8a3   : > { %v2771_v6 = vpop.permute.xlu1 %2770  ;;  %v2766_v12 = vpop.permute.xlu0 %2765 }
 0x8a4   : > { %v2796_v53 = vmul.f32 %v2771_v6, %v2668_v3  ;;  %v2795_v17 = vmul.f32 %v2766_v12, %v2667_v44  ;;  %3668 = vmatprep.mubr.msk.bf16.mxu0 %vm1701_vm6, %v2801_v63 }
 0x8a6   : > { %v2805_v57 = vpack.c.bf16 %v2796_v53, %v2795_v17 }
 0x8a7   : > { %v2741_v0 = vpop.permute.xlu1 %2740  ;;  %v2736_v55 = vpop.permute.xlu0 %2735 }
 0x8a8   : > { %v2790_v50 = vmul.f32 %v2741_v0, %v2662_v52  ;;  %v2789_v36 = vmul.f32 %v2736_v55, %v2661_v37  ;;  %3676 = vmatprep.mubr.msk.bf16.mxu1 %vm1701_vm6, %v2805_v57  ;;  %v5482_v37 = vld [vmem:[#allocation12_spill] sm:$0xff] }
 0x8aa   : > { %v2802_v11 = vpack.c.bf16 %v2790_v50, %v2789_v36 }
 0x8ab   : > { %v2781_v30 = vpop.permute.xlu1 %2780  ;;  %v2776_v58 = vpop.permute.xlu0 %2775 }
 0x8ac   : > { %v2798_v39 = vmul.f32 %v2781_v30, %v2670_v2  ;;  %v2797_v5 = vmul.f32 %v2776_v58, %v2669_v23  ;;  %3669 = vmatmul.mubr.msk.bf16.gmra.mrb[4].mxu0 %vm1701_vm6, %v2802_v11 }
 0x8ae   : > { %v2806_v60 = vpack.c.bf16 %v2798_v39, %v2797_v5 }
 0x8b0   : > { %3677 = vmatmul.mubr.msk.bf16.gmra.mrb[4].mxu1 %vm1701_vm6, %v2806_v60 }
 0x96f   : > { %v3666_v22 = vpop.f32.mrb[0].mxu0 }
 0x970   : > { %v2913_v62 = vadd.f32 %v3666_v22, %v3194_v61  ;;  %v2904_v9 = vpop.f32.mrb[1].mxu0 }
 0x971   : > { %v2905_v25 = vadd.f32 %v3194_v61, %v2904_v9  ;;  %v3667_v8 = vpop.f32.mrb[2].mxu0 }
 0x972   : > { %v2969_v38 = vadd.f32 %v2913_v62, %v4739_v45  ;;  %v2916_v16 = vadd.f32 %v3667_v8, %v3194_v61  ;;  %v2907_v42 = vpop.f32.mrb[3].mxu0 }
 0x973   : > { %v2967_v13 = vadd.f32 %v2905_v25, %v4667_v18  ;;  %v2908_v33 = vadd.f32 %v3194_v61, %v2907_v42  ;;  %v3674_v7 = vpop.f32.mrb[0].mxu1 }
 0x974   : > { %2985 = vst.msk [vmem:[%s4160_s20 + $0x10] sm:$0xff] %vm1701_vm6, %v2969_v38  ;;  %v2970_v49 = vadd.f32 %v2916_v16, %v4742_v46  ;;  %v2945_v59 = vadd.f32 %v3674_v7, %v3194_v61  ;;  %v2936_v1 = vpop.f32.mrb[1].mxu1 }
 0x975   : > { %2983 = vst.msk [vmem:[%s4160_s20] sm:$0xff] %vm1701_vm6, %v2967_v13  ;;  %v2968_v45 = vadd.f32 %v2908_v33, %v4670_v24  ;;  %v2937_v48 = vadd.f32 %v3194_v61, %v2936_v1  ;;  %v3675_v31 = vpop.f32.mrb[2].mxu1 }
 0x976   : > { %2986 = vst.msk [vmem:[%s4160_s20 + $0x18] sm:$0xff] %vm1701_vm6, %v2970_v49  ;;  %v2977_v18 = vadd.f32 %v2945_v59, %v4745_v47  ;;  %v2948_v19 = vadd.f32 %v3675_v31, %v3194_v61  ;;  %v2939_v26 = vpop.f32.mrb[3].mxu1 }
 0x977   : > { %2984 = vst.msk [vmem:[%s4160_s20 + $0x8] sm:$0xff] %vm1701_vm6, %v2968_v45  ;;  %v2975_v46 = vadd.f32 %v2937_v48, %v4729_v35  ;;  %v2940_v41 = vadd.f32 %v3194_v61, %v2939_v26 }
 0x978   : > { %2993 = vst.msk [vmem:[%s4160_s20 + $0x50] sm:$0xff] %vm1701_vm6, %v2977_v18  ;;  %v2978_v56 = vadd.f32 %v2948_v19, %v4754_v4 }
 0x979   : > { %2991 = vst.msk [vmem:[%s4160_s20 + $0x40] sm:$0xff] %vm1701_vm6, %v2975_v46  ;;  %v2976_v24 = vadd.f32 %v2940_v41, %v4732_v40 }
 0x97a   : > { %2994 = vst.msk [vmem:[%s4160_s20 + $0x58] sm:$0xff] %vm1701_vm6, %v2978_v56 }
 0x97b   : > { %2992 = vst.msk [vmem:[%s4160_s20 + $0x48] sm:$0xff] %vm1701_vm6, %v2976_v24 }
 0x97f   : > { %v3670_v47 = vpop.f32.mrb[4].mxu0 }
 0x980   : > { %v2929_v51 = vadd.f32 %v3670_v47, %v3194_v61  ;;  %v2920_v43 = vpop.f32.mrb[5].mxu0 }
 0x981   : > { %v2921_v34 = vadd.f32 %v3194_v61, %v2920_v43  ;;  %v3671_v35 = vpop.f32.mrb[6].mxu0 }
 0x982   : > { %v2973_v32 = vadd.f32 %v2929_v51, %v4794_v21  ;;  %v2932_v10 = vadd.f32 %v3671_v35, %v3194_v61  ;;  %v2923_v4 = vpop.f32.mrb[7].mxu0 }
 0x983   : > { %v2971_v29 = vadd.f32 %v2921_v34, %v4757_v14  ;;  %v2924_v54 = vadd.f32 %v3194_v61, %v2923_v4  ;;  %v3678_v40 = vpop.f32.mrb[4].mxu1  ;;  %v5480_v14 = vld [vmem:[#allocation11_spill] sm:$0xff] }
 0x984   : > { %2989 = vst.msk [vmem:[%s4160_s20 + $0x30] sm:$0xff] %vm1701_vm6, %v2973_v32  ;;  %v2974_v27 = vadd.f32 %v2932_v10, %v4797_v28  ;;  %v2961_v20 = vadd.f32 %v3678_v40, %v3194_v61  ;;  %v2952_v3 = vpop.f32.mrb[5].mxu1  ;;  %v5481_v28 = vld [vmem:[#allocation9_spill] sm:$0xff] }
 0x985   : > { %2987 = vst.msk [vmem:[%s4160_s20 + $0x20] sm:$0xff] %vm1701_vm6, %v2971_v29  ;;  %v2972_v21 = vadd.f32 %v2924_v54, %v4760_v15  ;;  %v2953_v44 = vadd.f32 %v3194_v61, %v2952_v3  ;;  %v3679_v63 = vpop.f32.mrb[6].mxu1  ;;  %v5483_v15 = vld [vmem:[#allocation10_spill] sm:$0xff] }
 0x986   : > { %2990 = vst.msk [vmem:[%s4160_s20 + $0x38] sm:$0xff] %vm1701_vm6, %v2974_v27  ;;  %v2981_v6 = vadd.f32 %v2961_v20, %v5480_v14  ;;  %v2964_v53 = vadd.f32 %v3679_v63, %v3194_v61  ;;  %v2955_v12 = vpop.f32.mrb[7].mxu1 }
 0x987   : > { %2988 = vst.msk [vmem:[%s4160_s20 + $0x28] sm:$0xff] %vm1701_vm6, %v2972_v21  ;;  %v2979_v17 = vadd.f32 %v2953_v44, %v5481_v28  ;;  %v2956_v52 = vadd.f32 %v3194_v61, %v2955_v12 }
 0x988   : > { %2997 = vst.msk [vmem:[%s4160_s20 + $0x70] sm:$0xff] %vm1701_vm6, %v2981_v6  ;;  %v2982_v57 = vadd.f32 %v2964_v53, %v5482_v37 }
 0x989   : > { %2995 = vst.msk [vmem:[%s4160_s20 + $0x60] sm:$0xff] %vm1701_vm6, %v2979_v17  ;;  %v2980_v0 = vadd.f32 %v2956_v52, %v5483_v15 }
 0x98a   : > { %2998 = vst.msk [vmem:[%s4160_s20 + $0x78] sm:$0xff] %vm1701_vm6, %v2982_v57 }
 0x98b   : > { %2996 = vst.msk [vmem:[%s4160_s20 + $0x68] sm:$0xff] %vm1701_vm6, %v2980_v0 }
 0x98c PF: > { %s22_s25 = sadd.s32 1, %s4040_s25   ;;  %s5484_s21 = smov %s4032_s23 }
 0x98d   : > { %p19_p9 = scmp.ge.s32.totalorder %s22_s25, 6   ;;  %s5485_s22 = smov %s4036_s24 }
 0x98e   : > { %s5486_s23 = smov %s5489_s26  ;;  %s5487_s24 = smov %s5493_s27 }
 0x98f   :  { %21 = sbr.rel (!%p19_p9) target bundleno = 3 (0x3), region = 123 }

</bundles_post_ra>
